<compile_context>
chip_gen: v7x
topology: tpu7x:2x2x1
jax: 0.10.0
libtpu: 0.0.40
codegen_flags: <defaults>
</compile_context>

<pallas_src>
import numpy as np
import jax
import jax.numpy as jnp
from jax import lax
from jax.experimental import pallas as pl
from jax.experimental.pallas import tpu as pltpu

# ---------------- model dims (small synthetic shapes) ----------------
N, CIN, H, W = 2, 4, 16, 16
CIN_PAD = 8                      # pad channels 4 -> 8 so every tap is a full sublane tile
COUT = 8
KH = KW = 3
NTAPS = KH * KW                  # 9
KDIM = NTAPS * CIN_PAD           # 72  (K of the fused conv matmul)
HO, WO = H // 2, W // 2
HW = H * W                       # 256
NHW = N * HW                     # 512 (lane extent of the fused activation)
HWO = HO * WO                    # 64
FC_IN = COUT * HWO               # 512
FC_OUT = 32


# ---------------- fused Pallas kernel: conv1 -> relu -> (pool∘fc) ----------------
def fused_kernel(x_ref, wc_ref, bc_ref, m_ref, g_ref, bf_ref,
                 conv_ref, fc_ref, taps_ref):
    """
    x_ref:    (CIN_PAD, N*HW)     input, both images side by side on the lane axis
    wc_ref:   (COUT, KDIM)        conv weights packed as (kh, kw, ci_pad)
    bc_ref:   (COUT, 1)           conv bias
    m_ref:    (NTAPS, 1, N*HW)    0/1 masks emulating 'same' zero padding (per tap)
    g_ref:    (COUT, HW, FC_OUT)  avg-pool folded into the fc weight (per channel)
    bf_ref:   (1, FC_OUT)         fc bias
    conv_ref: (N, COUT, HW)       extracted 'conv1' output (pre-relu), lane-dense
    fc_ref:   (N, FC_OUT)         extracted 'fc' output
    taps_ref: (KDIM, N*HW)        VMEM scratch: im2col matrix, (8,128)-aligned tiles
    """
    # ---- im2col in VMEM: one lane roll + masked store per tap, both images at once ----
    x = x_ref[...]                              # (CIN_PAD, N*HW)
    for kh in range(KH):
        for kw in range(KW):
            t = kh * KW + kw
            s = (kh - 1) * W + (kw - 1)         # flat spatial shift of this tap
            shifted = x if s == 0 else pltpu.roll(x, (-s) % NHW, 1)
            # mask zeroes every out-of-image tap, which includes all wrap positions
            taps_ref[pl.ds(t * CIN_PAD, CIN_PAD), :] = shifted * m_ref[t]

    # ---- conv: one K=72 MXU matmul covering both images; lane-dense (8, 512) ----
    conv_lin = (jnp.dot(wc_ref[...], taps_ref[...],
                        preferred_element_type=jnp.float32)
                + bc_ref[...])                  # (COUT, N*HW)
    act = jnp.maximum(conv_lin, 0.0)            # relu (downstream path only)

    # ---- per image: store extracted conv1 (pre-relu) and run the pool-fused fc ----
    for n in range(N):                          # static unroll, N = 2
        lo = n * HW
        conv_ref[n] = conv_lin[:, lo:lo + HW]   # (COUT, HW), 128-aligned lane slice
        # fc with the 2x2 average pool folded into g_ref; PyTorch flatten order
        # (co, ho, wo) realized via per-channel weight slabs — no in-kernel reshape.
        row = bf_ref[...]                       # (1, FC_OUT)
        for co in range(COUT):
            row = row + jnp.dot(act[co:co + 1, lo:lo + HW],   # (1, HW)
                                g_ref[co],                    # (HW, FC_OUT)
                                preferred_element_type=jnp.float32)
        fc_ref[pl.ds(n, 1), :] = row


# ---------------- wrapper: parameter packing + the single pallas_call ----------------
def make_fused_forward(w_conv, b_conv, w_fc, b_fc):
    # conv weights (COUT, CIN, KH, KW) -> (COUT, KDIM), index order (kh, kw, ci_pad)
    wc = jnp.transpose(w_conv, (0, 2, 3, 1))                     # (COUT, KH, KW, CIN)
    wc = jnp.pad(wc, ((0, 0), (0, 0), (0, 0), (0, CIN_PAD - CIN)))
    wc = wc.reshape(COUT, KDIM).astype(jnp.float32)
    bc = b_conv.reshape(COUT, 1).astype(jnp.float32)

    # 0/1 masks per tap emulating zero padding=1 (exact), tiled across both images
    m = np.zeros((NTAPS, 1, HW), np.float32)
    for kh in range(KH):
        for kw in range(KW):
            t = kh * KW + kw
            for h in range(H):
                for w in range(W):
                    if 0 <= h + kh - 1 < H and 0 <= w + kw - 1 < W:
                        m[t, 0, h * W + w] = 1.0
    m = jnp.asarray(np.tile(m, (1, 1, N)))                       # (NTAPS, 1, N*HW)

    # Fold AvgPool2d(2) (linear, post-relu) into the fc weight:
    #   G[co, h*W + w, j] = 0.25 * w_fc[j, co*HWO + (h//2)*WO + (w//2)]
    wf3 = w_fc.reshape(FC_OUT, COUT, HO, WO).astype(jnp.float32)
    g = jnp.repeat(jnp.repeat(wf3, 2, axis=2), 2, axis=3)        # (FC_OUT, COUT, H, W)
    g = (0.25 * jnp.transpose(g, (1, 2, 3, 0))).reshape(COUT, HW, FC_OUT)
    bf = b_fc.reshape(1, FC_OUT).astype(jnp.float32)

    call = pl.pallas_call(
        fused_kernel,
        out_shape=(jax.ShapeDtypeStruct((N, COUT, HW), jnp.float32),
                   jax.ShapeDtypeStruct((N, FC_OUT), jnp.float32)),
        scratch_shapes=[pltpu.VMEM((KDIM, NHW), jnp.float32)],
    )

    @jax.jit
    def forward(x_nchw):
        # NCHW -> (CIN_PAD, N*HW): view-reshape/transpose + tiny zero channel pad.
        x2 = jnp.transpose(x_nchw.reshape(N, CIN, HW), (1, 0, 2)).reshape(CIN, NHW)
        x2 = jnp.pad(x2, ((0, CIN_PAD - CIN), (0, 0)))
        conv_flat, fc_out = call(x2, wc, bc, m, g, bf)
        conv1_out = conv_flat.reshape(N, COUT, H, W)             # pure view, NCHW
        return conv1_out, fc_out

    return forward


# ---------------- FeatureExtractor (semantics of the PyTorch module) ----------------
class FeatureExtractor:
    """Walks conv1 -> relu -> pool -> fc (flatten before 'fc') and returns the
    outputs named in extracted_layers, exactly like the PyTorch module. The whole
    chain executes as one fused Pallas kernel whose two outputs are the 'conv1'
    and 'fc' extraction points."""
    # TODO(synk): extracting 'relu'/'pool' (or walking an arbitrary submodule)
    # would require additional kernel outputs; the fused kernel only exposes
    # 'conv1' and 'fc', the layers requested here.

    _LAYER_ORDER = ('conv1', 'relu', 'pool', 'fc')

    def __init__(self, fused_forward, extracted_layers):
        assert set(extracted_layers) <= {'conv1', 'fc'}
        self.fused_forward = fused_forward
        self.extracted_layers = extracted_layers

    def __call__(self, x):
        conv1_out, fc_out = self.fused_forward(x)
        produced = {'conv1': conv1_out, 'fc': fc_out}
        return [produced[name] for name in self._LAYER_ORDER
                if name in self.extracted_layers]


# ---------------- main ----------------
if __name__ == "__main__":
    key = jax.random.PRNGKey(0)
    kx, kcw, kcb, kfw, kfb = jax.random.split(key, 5)
    x = jax.random.normal(kx, (N, CIN, H, W), jnp.float32)
    w_conv = 0.1 * jax.random.normal(kcw, (COUT, CIN, KH, KW), jnp.float32)
    b_conv = 0.1 * jax.random.normal(kcb, (COUT,), jnp.float32)
    w_fc = 0.05 * jax.random.normal(kfw, (FC_OUT, FC_IN), jnp.float32)
    b_fc = 0.1 * jax.random.normal(kfb, (FC_OUT,), jnp.float32)

    forward = make_fused_forward(w_conv, b_conv, w_fc, b_fc)
    extractor = FeatureExtractor(forward, extracted_layers=['conv1', 'fc'])

    outputs = extractor(x)
    outputs = [jax.block_until_ready(o) for o in outputs]

    # pure-JAX reference of the same forward pass (sanity check)
    hp = lax.Precision.HIGHEST
    conv_ref = lax.conv_general_dilated(
        x, w_conv, (1, 1), ((1, 1), (1, 1)),
        dimension_numbers=('NCHW', 'OIHW', 'NCHW'), precision=hp,
    ) + b_conv[None, :, None, None]
    r = jnp.maximum(conv_ref, 0.0)
    pool_ref = r.reshape(N, COUT, HO, 2, WO, 2).mean(axis=(3, 5))
    fc_ref = jnp.dot(pool_ref.reshape(N, -1), w_fc.T, precision=hp) + b_fc

    assert outputs[0].shape == (N, COUT, H, W)
    assert outputs[1].shape == (N, FC_OUT)
    assert jnp.allclose(outputs[0], conv_ref, rtol=2e-2, atol=2e-2)
    assert jnp.allclose(outputs[1], fc_ref, rtol=2e-2, atol=2e-2)
    print("KERNEL_OK")
</pallas_src>

<mosaic_0001>
module attributes {stable_mosaic.version = 11 : i64} {
  func.func @fused_kernel(%arg0: memref<8x512xf32, #tpu.memory_space<vmem>>, %arg1: memref<8x72xf32, #tpu.memory_space<vmem>>, %arg2: memref<8x1xf32, #tpu.memory_space<vmem>>, %arg3: memref<9x1x512xf32, #tpu.memory_space<vmem>>, %arg4: memref<8x256x32xf32, #tpu.memory_space<vmem>>, %arg5: memref<1x32xf32, #tpu.memory_space<vmem>>, %arg6: memref<2x8x256xf32, #tpu.memory_space<vmem>>, %arg7: memref<2x32xf32, #tpu.memory_space<vmem>>, %arg8: memref<72x512xf32, #tpu.memory_space<vmem>>) attributes {dimension_semantics = [], scalar_prefetch = 0 : i64, scratch_operands = 1 : i64, tpu.core_type = #tpu.core_type<tc>} {
    %c0 = arith.constant 0 : index
    %c0_0 = arith.constant 0 : index
    %0 = vector.load %arg0[%c0, %c0_0] : memref<8x512xf32, #tpu.memory_space<vmem>>, vector<8x512xf32>
    %c17_i32 = arith.constant 17 : i32
    %1 = tpu.dynamic_rotate %0 by %c17_i32 dim 1 : vector<8x512xf32>, i32 -> vector<8x512xf32>
    %c0_1 = arith.constant 0 : index
    %c0_2 = arith.constant 0 : index
    %c0_3 = arith.constant 0 : index
    %2 = vector.load %arg3[%c0_1, %c0_2, %c0_3] : memref<9x1x512xf32, #tpu.memory_space<vmem>>, vector<1x1x512xf32>
    %3 = vector.shape_cast %2 : vector<1x1x512xf32> to vector<1x512xf32>
    %4 = vector.broadcast %3 : vector<1x512xf32> to vector<8x512xf32>
    %5 = arith.mulf %1, %4 : vector<8x512xf32>
    %c0_4 = arith.constant 0 : index
    %c0_5 = arith.constant 0 : index
    %6 = vector.load %arg8[%c0_4, %c0_5] : memref<72x512xf32, #tpu.memory_space<vmem>>, vector<8x512xf32>
    tpu.vector_store %arg8[%c0_4, %c0_5], %5 {strides = array<i32>} : memref<72x512xf32, #tpu.memory_space<vmem>>, vector<8x512xf32>,
    %c16_i32 = arith.constant 16 : i32
    %7 = tpu.dynamic_rotate %0 by %c16_i32 dim 1 : vector<8x512xf32>, i32 -> vector<8x512xf32>
    %c1 = arith.constant 1 : index
    %c0_6 = arith.constant 0 : index
    %c0_7 = arith.constant 0 : index
    %8 = vector.load %arg3[%c1, %c0_6, %c0_7] : memref<9x1x512xf32, #tpu.memory_space<vmem>>, vector<1x1x512xf32>
    %9 = vector.shape_cast %8 : vector<1x1x512xf32> to vector<1x512xf32>
    %10 = vector.broadcast %9 : vector<1x512xf32> to vector<8x512xf32>
    %11 = arith.mulf %7, %10 : vector<8x512xf32>
    %c8 = arith.constant 8 : index
    %c0_8 = arith.constant 0 : index
    %12 = vector.load %arg8[%c8, %c0_8] : memref<72x512xf32, #tpu.memory_space<vmem>>, vector<8x512xf32>
    tpu.vector_store %arg8[%c8, %c0_8], %11 {strides = array<i32>} : memref<72x512xf32, #tpu.memory_space<vmem>>, vector<8x512xf32>,
    %c15_i32 = arith.constant 15 : i32
    %13 = tpu.dynamic_rotate %0 by %c15_i32 dim 1 : vector<8x512xf32>, i32 -> vector<8x512xf32>
    %c2 = arith.constant 2 : index
    %c0_9 = arith.constant 0 : index
    %c0_10 = arith.constant 0 : index
    %14 = vector.load %arg3[%c2, %c0_9, %c0_10] : memref<9x1x512xf32, #tpu.memory_space<vmem>>, vector<1x1x512xf32>
    %15 = vector.shape_cast %14 : vector<1x1x512xf32> to vector<1x512xf32>
    %16 = vector.broadcast %15 : vector<1x512xf32> to vector<8x512xf32>
    %17 = arith.mulf %13, %16 : vector<8x512xf32>
    %c16 = arith.constant 16 : index
    %c0_11 = arith.constant 0 : index
    %18 = vector.load %arg8[%c16, %c0_11] : memref<72x512xf32, #tpu.memory_space<vmem>>, vector<8x512xf32>
    tpu.vector_store %arg8[%c16, %c0_11], %17 {strides = array<i32>} : memref<72x512xf32, #tpu.memory_space<vmem>>, vector<8x512xf32>,
    %c1_i32 = arith.constant 1 : i32
    %19 = tpu.dynamic_rotate %0 by %c1_i32 dim 1 : vector<8x512xf32>, i32 -> vector<8x512xf32>
    %c3 = arith.constant 3 : index
    %c0_12 = arith.constant 0 : index
    %c0_13 = arith.constant 0 : index
    %20 = vector.load %arg3[%c3, %c0_12, %c0_13] : memref<9x1x512xf32, #tpu.memory_space<vmem>>, vector<1x1x512xf32>
    %21 = vector.shape_cast %20 : vector<1x1x512xf32> to vector<1x512xf32>
    %22 = vector.broadcast %21 : vector<1x512xf32> to vector<8x512xf32>
    %23 = arith.mulf %19, %22 : vector<8x512xf32>
    %c24 = arith.constant 24 : index
    %c0_14 = arith.constant 0 : index
    %24 = vector.load %arg8[%c24, %c0_14] : memref<72x512xf32, #tpu.memory_space<vmem>>, vector<8x512xf32>
    tpu.vector_store %arg8[%c24, %c0_14], %23 {strides = array<i32>} : memref<72x512xf32, #tpu.memory_space<vmem>>, vector<8x512xf32>,
    %c4 = arith.constant 4 : index
    %c0_15 = arith.constant 0 : index
    %c0_16 = arith.constant 0 : index
    %25 = vector.load %arg3[%c4, %c0_15, %c0_16] : memref<9x1x512xf32, #tpu.memory_space<vmem>>, vector<1x1x512xf32>
    %26 = vector.shape_cast %25 : vector<1x1x512xf32> to vector<1x512xf32>
    %27 = vector.broadcast %26 : vector<1x512xf32> to vector<8x512xf32>
    %28 = arith.mulf %0, %27 : vector<8x512xf32>
    %c32 = arith.constant 32 : index
    %c0_17 = arith.constant 0 : index
    %29 = vector.load %arg8[%c32, %c0_17] : memref<72x512xf32, #tpu.memory_space<vmem>>, vector<8x512xf32>
    tpu.vector_store %arg8[%c32, %c0_17], %28 {strides = array<i32>} : memref<72x512xf32, #tpu.memory_space<vmem>>, vector<8x512xf32>,
    %c511_i32 = arith.constant 511 : i32
    %30 = tpu.dynamic_rotate %0 by %c511_i32 dim 1 : vector<8x512xf32>, i32 -> vector<8x512xf32>
    %c5 = arith.constant 5 : index
    %c0_18 = arith.constant 0 : index
    %c0_19 = arith.constant 0 : index
    %31 = vector.load %arg3[%c5, %c0_18, %c0_19] : memref<9x1x512xf32, #tpu.memory_space<vmem>>, vector<1x1x512xf32>
    %32 = vector.shape_cast %31 : vector<1x1x512xf32> to vector<1x512xf32>
    %33 = vector.broadcast %32 : vector<1x512xf32> to vector<8x512xf32>
    %34 = arith.mulf %30, %33 : vector<8x512xf32>
    %c40 = arith.constant 40 : index
    %c0_20 = arith.constant 0 : index
    %35 = vector.load %arg8[%c40, %c0_20] : memref<72x512xf32, #tpu.memory_space<vmem>>, vector<8x512xf32>
    tpu.vector_store %arg8[%c40, %c0_20], %34 {strides = array<i32>} : memref<72x512xf32, #tpu.memory_space<vmem>>, vector<8x512xf32>,
    %c497_i32 = arith.constant 497 : i32
    %36 = tpu.dynamic_rotate %0 by %c497_i32 dim 1 : vector<8x512xf32>, i32 -> vector<8x512xf32>
    %c6 = arith.constant 6 : index
    %c0_21 = arith.constant 0 : index
    %c0_22 = arith.constant 0 : index
    %37 = vector.load %arg3[%c6, %c0_21, %c0_22] : memref<9x1x512xf32, #tpu.memory_space<vmem>>, vector<1x1x512xf32>
    %38 = vector.shape_cast %37 : vector<1x1x512xf32> to vector<1x512xf32>
    %39 = vector.broadcast %38 : vector<1x512xf32> to vector<8x512xf32>
    %40 = arith.mulf %36, %39 : vector<8x512xf32>
    %c48 = arith.constant 48 : index
    %c0_23 = arith.constant 0 : index
    %41 = vector.load %arg8[%c48, %c0_23] : memref<72x512xf32, #tpu.memory_space<vmem>>, vector<8x512xf32>
    tpu.vector_store %arg8[%c48, %c0_23], %40 {strides = array<i32>} : memref<72x512xf32, #tpu.memory_space<vmem>>, vector<8x512xf32>,
    %c496_i32 = arith.constant 496 : i32
    %42 = tpu.dynamic_rotate %0 by %c496_i32 dim 1 : vector<8x512xf32>, i32 -> vector<8x512xf32>
    %c7 = arith.constant 7 : index
    %c0_24 = arith.constant 0 : index
    %c0_25 = arith.constant 0 : index
    %43 = vector.load %arg3[%c7, %c0_24, %c0_25] : memref<9x1x512xf32, #tpu.memory_space<vmem>>, vector<1x1x512xf32>
    %44 = vector.shape_cast %43 : vector<1x1x512xf32> to vector<1x512xf32>
    %45 = vector.broadcast %44 : vector<1x512xf32> to vector<8x512xf32>
    %46 = arith.mulf %42, %45 : vector<8x512xf32>
    %c56 = arith.constant 56 : index
    %c0_26 = arith.constant 0 : index
    %47 = vector.load %arg8[%c56, %c0_26] : memref<72x512xf32, #tpu.memory_space<vmem>>, vector<8x512xf32>
    tpu.vector_store %arg8[%c56, %c0_26], %46 {strides = array<i32>} : memref<72x512xf32, #tpu.memory_space<vmem>>, vector<8x512xf32>,
    %c495_i32 = arith.constant 495 : i32
    %48 = tpu.dynamic_rotate %0 by %c495_i32 dim 1 : vector<8x512xf32>, i32 -> vector<8x512xf32>
    %c8_27 = arith.constant 8 : index
    %c0_28 = arith.constant 0 : index
    %c0_29 = arith.constant 0 : index
    %49 = vector.load %arg3[%c8_27, %c0_28, %c0_29] : memref<9x1x512xf32, #tpu.memory_space<vmem>>, vector<1x1x512xf32>
    %50 = vector.shape_cast %49 : vector<1x1x512xf32> to vector<1x512xf32>
    %51 = vector.broadcast %50 : vector<1x512xf32> to vector<8x512xf32>
    %52 = arith.mulf %48, %51 : vector<8x512xf32>
    %c64 = arith.constant 64 : index
    %c0_30 = arith.constant 0 : index
    %53 = vector.load %arg8[%c64, %c0_30] : memref<72x512xf32, #tpu.memory_space<vmem>>, vector<8x512xf32>
    tpu.vector_store %arg8[%c64, %c0_30], %52 {strides = array<i32>} : memref<72x512xf32, #tpu.memory_space<vmem>>, vector<8x512xf32>,
    %c0_31 = arith.constant 0 : index
    %c0_32 = arith.constant 0 : index
    %54 = vector.load %arg1[%c0_31, %c0_32] : memref<8x72xf32, #tpu.memory_space<vmem>>, vector<8x72xf32>
    %c0_33 = arith.constant 0 : index
    %c0_34 = arith.constant 0 : index
    %55 = vector.load %arg8[%c0_33, %c0_34] : memref<72x512xf32, #tpu.memory_space<vmem>>, vector<72x512xf32>
    %cst = arith.constant dense<0.000000e+00> : vector<8x512xf32>
    %56 = tpu.matmul %54, %55, %cst {dimension_numbers = #tpu.dot_dimension_numbers<[1], [0], [0], [1], [0, 0, 1, 1], [], []>} : vector<8x72xf32>, vector<72x512xf32>, vector<8x512xf32> -> vector<8x512xf32>
    %c0_35 = arith.constant 0 : index
    %c0_36 = arith.constant 0 : index
    %57 = vector.load %arg2[%c0_35, %c0_36] : memref<8x1xf32, #tpu.memory_space<vmem>>, vector<8x1xf32>
    %58 = vector.broadcast %57 : vector<8x1xf32> to vector<8x512xf32>
    %59 = arith.addf %56, %58 : vector<8x512xf32>
    %cst_37 = arith.constant 0.000000e+00 : f32
    %60 = vector.broadcast %cst_37 : f32 to vector<8x512xf32>
    %61 = arith.maximumf %59, %60 : vector<8x512xf32>
    %62 = vector.extract_strided_slice %59 {offsets = [0, 0], sizes = [8, 256], strides = [1, 1]} : vector<8x512xf32> to vector<8x256xf32>
    %c0_38 = arith.constant 0 : index
    %c0_39 = arith.constant 0 : index
    %c0_40 = arith.constant 0 : index
    %63 = vector.load %arg6[%c0_38, %c0_39, %c0_40] : memref<2x8x256xf32, #tpu.memory_space<vmem>>, vector<1x8x256xf32>
    %64 = vector.shape_cast %63 : vector<1x8x256xf32> to vector<8x256xf32>
    %65 = vector.shape_cast %62 : vector<8x256xf32> to vector<1x8x256xf32>
    tpu.vector_store %arg6[%c0_38, %c0_39, %c0_40], %65 {strides = array<i32>} : memref<2x8x256xf32, #tpu.memory_space<vmem>>, vector<1x8x256xf32>,
    %c0_41 = arith.constant 0 : index
    %c0_42 = arith.constant 0 : index
    %66 = vector.load %arg5[%c0_41, %c0_42] : memref<1x32xf32, #tpu.memory_space<vmem>>, vector<1x32xf32>
    %67 = vector.extract_strided_slice %61 {offsets = [0, 0], sizes = [1, 256], strides = [1, 1]} : vector<8x512xf32> to vector<1x256xf32>
    %c0_43 = arith.constant 0 : index
    %c0_44 = arith.constant 0 : index
    %c0_45 = arith.constant 0 : index
    %68 = vector.load %arg4[%c0_43, %c0_44, %c0_45] : memref<8x256x32xf32, #tpu.memory_space<vmem>>, vector<1x256x32xf32>
    %69 = vector.shape_cast %68 : vector<1x256x32xf32> to vector<256x32xf32>
    %cst_46 = arith.constant dense<0.000000e+00> : vector<1x32xf32>
    %70 = tpu.matmul %67, %69, %cst_46 {dimension_numbers = #tpu.dot_dimension_numbers<[1], [0], [0], [1], [0, 0, 1, 1], [], []>} : vector<1x256xf32>, vector<256x32xf32>, vector<1x32xf32> -> vector<1x32xf32>
    %71 = arith.addf %66, %70 : vector<1x32xf32>
    %72 = vector.extract_strided_slice %61 {offsets = [1, 0], sizes = [1, 256], strides = [1, 1]} : vector<8x512xf32> to vector<1x256xf32>
    %c1_47 = arith.constant 1 : index
    %c0_48 = arith.constant 0 : index
    %c0_49 = arith.constant 0 : index
    %73 = vector.load %arg4[%c1_47, %c0_48, %c0_49] : memref<8x256x32xf32, #tpu.memory_space<vmem>>, vector<1x256x32xf32>
    %74 = vector.shape_cast %73 : vector<1x256x32xf32> to vector<256x32xf32>
    %cst_50 = arith.constant dense<0.000000e+00> : vector<1x32xf32>
    %75 = tpu.matmul %72, %74, %cst_50 {dimension_numbers = #tpu.dot_dimension_numbers<[1], [0], [0], [1], [0, 0, 1, 1], [], []>} : vector<1x256xf32>, vector<256x32xf32>, vector<1x32xf32> -> vector<1x32xf32>
    %76 = arith.addf %71, %75 : vector<1x32xf32>
    %77 = vector.extract_strided_slice %61 {offsets = [2, 0], sizes = [1, 256], strides = [1, 1]} : vector<8x512xf32> to vector<1x256xf32>
    %c2_51 = arith.constant 2 : index
    %c0_52 = arith.constant 0 : index
    %c0_53 = arith.constant 0 : index
    %78 = vector.load %arg4[%c2_51, %c0_52, %c0_53] : memref<8x256x32xf32, #tpu.memory_space<vmem>>, vector<1x256x32xf32>
    %79 = vector.shape_cast %78 : vector<1x256x32xf32> to vector<256x32xf32>
    %cst_54 = arith.constant dense<0.000000e+00> : vector<1x32xf32>
    %80 = tpu.matmul %77, %79, %cst_54 {dimension_numbers = #tpu.dot_dimension_numbers<[1], [0], [0], [1], [0, 0, 1, 1], [], []>} : vector<1x256xf32>, vector<256x32xf32>, vector<1x32xf32> -> vector<1x32xf32>
    %81 = arith.addf %76, %80 : vector<1x32xf32>
    %82 = vector.extract_strided_slice %61 {offsets = [3, 0], sizes = [1, 256], strides = [1, 1]} : vector<8x512xf32> to vector<1x256xf32>
    %c3_55 = arith.constant 3 : index
    %c0_56 = arith.constant 0 : index
    %c0_57 = arith.constant 0 : index
    %83 = vector.load %arg4[%c3_55, %c0_56, %c0_57] : memref<8x256x32xf32, #tpu.memory_space<vmem>>, vector<1x256x32xf32>
    %84 = vector.shape_cast %83 : vector<1x256x32xf32> to vector<256x32xf32>
    %cst_58 = arith.constant dense<0.000000e+00> : vector<1x32xf32>
    %85 = tpu.matmul %82, %84, %cst_58 {dimension_numbers = #tpu.dot_dimension_numbers<[1], [0], [0], [1], [0, 0, 1, 1], [], []>} : vector<1x256xf32>, vector<256x32xf32>, vector<1x32xf32> -> vector<1x32xf32>
    %86 = arith.addf %81, %85 : vector<1x32xf32>
    %87 = vector.extract_strided_slice %61 {offsets = [4, 0], sizes = [1, 256], strides = [1, 1]} : vector<8x512xf32> to vector<1x256xf32>
    %c4_59 = arith.constant 4 : index
    %c0_60 = arith.constant 0 : index
    %c0_61 = arith.constant 0 : index
    %88 = vector.load %arg4[%c4_59, %c0_60, %c0_61] : memref<8x256x32xf32, #tpu.memory_space<vmem>>, vector<1x256x32xf32>
    %89 = vector.shape_cast %88 : vector<1x256x32xf32> to vector<256x32xf32>
    %cst_62 = arith.constant dense<0.000000e+00> : vector<1x32xf32>
    %90 = tpu.matmul %87, %89, %cst_62 {dimension_numbers = #tpu.dot_dimension_numbers<[1], [0], [0], [1], [0, 0, 1, 1], [], []>} : vector<1x256xf32>, vector<256x32xf32>, vector<1x32xf32> -> vector<1x32xf32>
    %91 = arith.addf %86, %90 : vector<1x32xf32>
    %92 = vector.extract_strided_slice %61 {offsets = [5, 0], sizes = [1, 256], strides = [1, 1]} : vector<8x512xf32> to vector<1x256xf32>
    %c5_63 = arith.constant 5 : index
    %c0_64 = arith.constant 0 : index
    %c0_65 = arith.constant 0 : index
    %93 = vector.load %arg4[%c5_63, %c0_64, %c0_65] : memref<8x256x32xf32, #tpu.memory_space<vmem>>, vector<1x256x32xf32>
    %94 = vector.shape_cast %93 : vector<1x256x32xf32> to vector<256x32xf32>
    %cst_66 = arith.constant dense<0.000000e+00> : vector<1x32xf32>
    %95 = tpu.matmul %92, %94, %cst_66 {dimension_numbers = #tpu.dot_dimension_numbers<[1], [0], [0], [1], [0, 0, 1, 1], [], []>} : vector<1x256xf32>, vector<256x32xf32>, vector<1x32xf32> -> vector<1x32xf32>
    %96 = arith.addf %91, %95 : vector<1x32xf32>
    %97 = vector.extract_strided_slice %61 {offsets = [6, 0], sizes = [1, 256], strides = [1, 1]} : vector<8x512xf32> to vector<1x256xf32>
    %c6_67 = arith.constant 6 : index
    %c0_68 = arith.constant 0 : index
    %c0_69 = arith.constant 0 : index
    %98 = vector.load %arg4[%c6_67, %c0_68, %c0_69] : memref<8x256x32xf32, #tpu.memory_space<vmem>>, vector<1x256x32xf32>
    %99 = vector.shape_cast %98 : vector<1x256x32xf32> to vector<256x32xf32>
    %cst_70 = arith.constant dense<0.000000e+00> : vector<1x32xf32>
    %100 = tpu.matmul %97, %99, %cst_70 {dimension_numbers = #tpu.dot_dimension_numbers<[1], [0], [0], [1], [0, 0, 1, 1], [], []>} : vector<1x256xf32>, vector<256x32xf32>, vector<1x32xf32> -> vector<1x32xf32>
    %101 = arith.addf %96, %100 : vector<1x32xf32>
    %102 = vector.extract_strided_slice %61 {offsets = [7, 0], sizes = [1, 256], strides = [1, 1]} : vector<8x512xf32> to vector<1x256xf32>
    %c7_71 = arith.constant 7 : index
    %c0_72 = arith.constant 0 : index
    %c0_73 = arith.constant 0 : index
    %103 = vector.load %arg4[%c7_71, %c0_72, %c0_73] : memref<8x256x32xf32, #tpu.memory_space<vmem>>, vector<1x256x32xf32>
    %104 = vector.shape_cast %103 : vector<1x256x32xf32> to vector<256x32xf32>
    %cst_74 = arith.constant dense<0.000000e+00> : vector<1x32xf32>
    %105 = tpu.matmul %102, %104, %cst_74 {dimension_numbers = #tpu.dot_dimension_numbers<[1], [0], [0], [1], [0, 0, 1, 1], [], []>} : vector<1x256xf32>, vector<256x32xf32>, vector<1x32xf32> -> vector<1x32xf32>
    %106 = arith.addf %101, %105 : vector<1x32xf32>
    %c0_75 = arith.constant 0 : index
    %c0_76 = arith.constant 0 : index
    %107 = vector.load %arg7[%c0_75, %c0_76] : memref<2x32xf32, #tpu.memory_space<vmem>>, vector<1x32xf32>
    tpu.vector_store %arg7[%c0_75, %c0_76], %106 {strides = array<i32>} : memref<2x32xf32, #tpu.memory_space<vmem>>, vector<1x32xf32>,
    %108 = vector.extract_strided_slice %59 {offsets = [0, 256], sizes = [8, 256], strides = [1, 1]} : vector<8x512xf32> to vector<8x256xf32>
    %c1_77 = arith.constant 1 : index
    %c0_78 = arith.constant 0 : index
    %c0_79 = arith.constant 0 : index
    %109 = vector.load %arg6[%c1_77, %c0_78, %c0_79] : memref<2x8x256xf32, #tpu.memory_space<vmem>>, vector<1x8x256xf32>
    %110 = vector.shape_cast %109 : vector<1x8x256xf32> to vector<8x256xf32>
    %111 = vector.shape_cast %108 : vector<8x256xf32> to vector<1x8x256xf32>
    tpu.vector_store %arg6[%c1_77, %c0_78, %c0_79], %111 {strides = array<i32>} : memref<2x8x256xf32, #tpu.memory_space<vmem>>, vector<1x8x256xf32>,
    %c0_80 = arith.constant 0 : index
    %c0_81 = arith.constant 0 : index
    %112 = vector.load %arg5[%c0_80, %c0_81] : memref<1x32xf32, #tpu.memory_space<vmem>>, vector<1x32xf32>
    %113 = vector.extract_strided_slice %61 {offsets = [0, 256], sizes = [1, 256], strides = [1, 1]} : vector<8x512xf32> to vector<1x256xf32>
    %c0_82 = arith.constant 0 : index
    %c0_83 = arith.constant 0 : index
    %c0_84 = arith.constant 0 : index
    %114 = vector.load %arg4[%c0_82, %c0_83, %c0_84] : memref<8x256x32xf32, #tpu.memory_space<vmem>>, vector<1x256x32xf32>
    %115 = vector.shape_cast %114 : vector<1x256x32xf32> to vector<256x32xf32>
    %cst_85 = arith.constant dense<0.000000e+00> : vector<1x32xf32>
    %116 = tpu.matmul %113, %115, %cst_85 {dimension_numbers = #tpu.dot_dimension_numbers<[1], [0], [0], [1], [0, 0, 1, 1], [], []>} : vector<1x256xf32>, vector<256x32xf32>, vector<1x32xf32> -> vector<1x32xf32>
    %117 = arith.addf %112, %116 : vector<1x32xf32>
    %118 = vector.extract_strided_slice %61 {offsets = [1, 256], sizes = [1, 256], strides = [1, 1]} : vector<8x512xf32> to vector<1x256xf32>
    %c1_86 = arith.constant 1 : index
    %c0_87 = arith.constant 0 : index
    %c0_88 = arith.constant 0 : index
    %119 = vector.load %arg4[%c1_86, %c0_87, %c0_88] : memref<8x256x32xf32, #tpu.memory_space<vmem>>, vector<1x256x32xf32>
    %120 = vector.shape_cast %119 : vector<1x256x32xf32> to vector<256x32xf32>
    %cst_89 = arith.constant dense<0.000000e+00> : vector<1x32xf32>
    %121 = tpu.matmul %118, %120, %cst_89 {dimension_numbers = #tpu.dot_dimension_numbers<[1], [0], [0], [1], [0, 0, 1, 1], [], []>} : vector<1x256xf32>, vector<256x32xf32>, vector<1x32xf32> -> vector<1x32xf32>
    %122 = arith.addf %117, %121 : vector<1x32xf32>
    %123 = vector.extract_strided_slice %61 {offsets = [2, 256], sizes = [1, 256], strides = [1, 1]} : vector<8x512xf32> to vector<1x256xf32>
    %c2_90 = arith.constant 2 : index
    %c0_91 = arith.constant 0 : index
    %c0_92 = arith.constant 0 : index
    %124 = vector.load %arg4[%c2_90, %c0_91, %c0_92] : memref<8x256x32xf32, #tpu.memory_space<vmem>>, vector<1x256x32xf32>
    %125 = vector.shape_cast %124 : vector<1x256x32xf32> to vector<256x32xf32>
    %cst_93 = arith.constant dense<0.000000e+00> : vector<1x32xf32>
    %126 = tpu.matmul %123, %125, %cst_93 {dimension_numbers = #tpu.dot_dimension_numbers<[1], [0], [0], [1], [0, 0, 1, 1], [], []>} : vector<1x256xf32>, vector<256x32xf32>, vector<1x32xf32> -> vector<1x32xf32>
    %127 = arith.addf %122, %126 : vector<1x32xf32>
    %128 = vector.extract_strided_slice %61 {offsets = [3, 256], sizes = [1, 256], strides = [1, 1]} : vector<8x512xf32> to vector<1x256xf32>
    %c3_94 = arith.constant 3 : index
    %c0_95 = arith.constant 0 : index
    %c0_96 = arith.constant 0 : index
    %129 = vector.load %arg4[%c3_94, %c0_95, %c0_96] : memref<8x256x32xf32, #tpu.memory_space<vmem>>, vector<1x256x32xf32>
    %130 = vector.shape_cast %129 : vector<1x256x32xf32> to vector<256x32xf32>
    %cst_97 = arith.constant dense<0.000000e+00> : vector<1x32xf32>
    %131 = tpu.matmul %128, %130, %cst_97 {dimension_numbers = #tpu.dot_dimension_numbers<[1], [0], [0], [1], [0, 0, 1, 1], [], []>} : vector<1x256xf32>, vector<256x32xf32>, vector<1x32xf32> -> vector<1x32xf32>
    %132 = arith.addf %127, %131 : vector<1x32xf32>
    %133 = vector.extract_strided_slice %61 {offsets = [4, 256], sizes = [1, 256], strides = [1, 1]} : vector<8x512xf32> to vector<1x256xf32>
    %c4_98 = arith.constant 4 : index
    %c0_99 = arith.constant 0 : index
    %c0_100 = arith.constant 0 : index
    %134 = vector.load %arg4[%c4_98, %c0_99, %c0_100] : memref<8x256x32xf32, #tpu.memory_space<vmem>>, vector<1x256x32xf32>
    %135 = vector.shape_cast %134 : vector<1x256x32xf32> to vector<256x32xf32>
    %cst_101 = arith.constant dense<0.000000e+00> : vector<1x32xf32>
    %136 = tpu.matmul %133, %135, %cst_101 {dimension_numbers = #tpu.dot_dimension_numbers<[1], [0], [0], [1], [0, 0, 1, 1], [], []>} : vector<1x256xf32>, vector<256x32xf32>, vector<1x32xf32> -> vector<1x32xf32>
    %137 = arith.addf %132, %136 : vector<1x32xf32>
    %138 = vector.extract_strided_slice %61 {offsets = [5, 256], sizes = [1, 256], strides = [1, 1]} : vector<8x512xf32> to vector<1x256xf32>
    %c5_102 = arith.constant 5 : index
    %c0_103 = arith.constant 0 : index
    %c0_104 = arith.constant 0 : index
    %139 = vector.load %arg4[%c5_102, %c0_103, %c0_104] : memref<8x256x32xf32, #tpu.memory_space<vmem>>, vector<1x256x32xf32>
    %140 = vector.shape_cast %139 : vector<1x256x32xf32> to vector<256x32xf32>
    %cst_105 = arith.constant dense<0.000000e+00> : vector<1x32xf32>
    %141 = tpu.matmul %138, %140, %cst_105 {dimension_numbers = #tpu.dot_dimension_numbers<[1], [0], [0], [1], [0, 0, 1, 1], [], []>} : vector<1x256xf32>, vector<256x32xf32>, vector<1x32xf32> -> vector<1x32xf32>
    %142 = arith.addf %137, %141 : vector<1x32xf32>
    %143 = vector.extract_strided_slice %61 {offsets = [6, 256], sizes = [1, 256], strides = [1, 1]} : vector<8x512xf32> to vector<1x256xf32>
    %c6_106 = arith.constant 6 : index
    %c0_107 = arith.constant 0 : index
    %c0_108 = arith.constant 0 : index
    %144 = vector.load %arg4[%c6_106, %c0_107, %c0_108] : memref<8x256x32xf32, #tpu.memory_space<vmem>>, vector<1x256x32xf32>
    %145 = vector.shape_cast %144 : vector<1x256x32xf32> to vector<256x32xf32>
    %cst_109 = arith.constant dense<0.000000e+00> : vector<1x32xf32>
    %146 = tpu.matmul %143, %145, %cst_109 {dimension_numbers = #tpu.dot_dimension_numbers<[1], [0], [0], [1], [0, 0, 1, 1], [], []>} : vector<1x256xf32>, vector<256x32xf32>, vector<1x32xf32> -> vector<1x32xf32>
    %147 = arith.addf %142, %146 : vector<1x32xf32>
    %148 = vector.extract_strided_slice %61 {offsets = [7, 256], sizes = [1, 256], strides = [1, 1]} : vector<8x512xf32> to vector<1x256xf32>
    %c7_110 = arith.constant 7 : index
    %c0_111 = arith.constant 0 : index
    %c0_112 = arith.constant 0 : index
    %149 = vector.load %arg4[%c7_110, %c0_111, %c0_112] : memref<8x256x32xf32, #tpu.memory_space<vmem>>, vector<1x256x32xf32>
    %150 = vector.shape_cast %149 : vector<1x256x32xf32> to vector<256x32xf32>
    %cst_113 = arith.constant dense<0.000000e+00> : vector<1x32xf32>
    %151 = tpu.matmul %148, %150, %cst_113 {dimension_numbers = #tpu.dot_dimension_numbers<[1], [0], [0], [1], [0, 0, 1, 1], [], []>} : vector<1x256xf32>, vector<256x32xf32>, vector<1x32xf32> -> vector<1x32xf32>
    %152 = arith.addf %147, %151 : vector<1x32xf32>
    %c1_114 = arith.constant 1 : index
    %c0_115 = arith.constant 0 : index
    %153 = vector.load %arg7[%c1_114, %c0_115] : memref<2x32xf32, #tpu.memory_space<vmem>>, vector<1x32xf32>
    tpu.vector_store %arg7[%c1_114, %c0_115], %152 {strides = array<i32>} : memref<2x32xf32, #tpu.memory_space<vmem>>, vector<1x32xf32>,
    return
  }
}

</mosaic_0001>

<bundles_post_ra>
// kernel: forward.1
= control target key start
LH: loop header
LB: loop body
LE: loop exit
PB: predicated region body
PF: predicated region fallthrough
CT: control target
= control target key end

     0   :  { %13 = vsyncpa [#allocation4], 0  ;;  %s4045_s0 = inlined_call_operand.vmem [shape: f32[8,512], index: 0, kind: input, shape index: {}]   ;;  %s4046_s1 = inlined_call_operand.vmem [shape: f32[8,72], index: 1, kind: input, shape index: {}]   ;;  %s4047_s2 = inlined_call_operand.vmem [shape: f32[8,1], index: 2, kind: input, shape index: {}]   ;;  %s4048_s3 = inlined_call_operand.vmem [shape: f32[9,1,512], index: 3, kind: input, shape index: {}]   ;;  %s4049_s4 = inlined_call_operand.hbm [shape: f32[8,256,32], index: 4, kind: input, shape index: {}]   ;;  %s4050_s5 = inlined_call_operand.vmem [shape: f32[1,32], index: 5, kind: input, shape index: {}]   ;;  %s4051_s6 = inlined_call_operand.vmem [shape: f32[2,8,256], index: 6, kind: output, shape index: {0}]   ;;  %s4052_s7 = inlined_call_operand.hbm [shape: f32[2,32], index: 7, kind: output, shape index: {1}]  }
   0x1   :  { %14 = vsyncpa [#allocation5], 0  ;;  %s3544_s24 = smov [#allocation3]   ;;  %s3496_s28 = scalar_lea.hbm %s4049_s4, 32768 }
   0x2   :  { %s28_s25 = sshll.u32 %s3544_s24, 4  ;;  %p3497_p0 = scmp.ne.s32.totalorder %s4049_s4, %s3496_s28  ;;  %s29_s25 = int_to_ptr.vmem [resolvable:$true] %s28_s25 }
   0x3   :  { %p3500_p1 = scmp.lt.u32.totalorder %s3496_s28, %s4049_s4 }
   0x5   :  { %p3502_p2 = pnand %p3500_p1, %p3497_p0 }
   0x7   :  { %3505 = shalt.err (!%p3502_p2)
}
   0x8   :  { %s3506_s10 = scalar_lea.vmem %s29_s25, 32768  ;;  %p3511_p4 = scmp.lt.s32.totalorder %s29_s25, %s29_s25 }
   0x9   :  { %p3507_p3 = scmp.ne.s32.totalorder %s29_s25, %s3506_s10  ;;  %p3512_p5 = scmp.lt.s32.totalorder %s3506_s10, %s3506_s10 }
   0xb   :  { %p3513_p6 = por %p3512_p5, %p3511_p4 }
   0xd   :  { %p3514_p7 = pnand %p3513_p6, %p3507_p3 }
   0xf   :  { %3517 = shalt.err (!%p3514_p7)
}
  0x10   :  { %s3545_s11 = smov 128   ;;  %s3546_s12 = smov 8  }
  0x11   :  { %34 = dma.hbm_to_vmem [thread:$0]  %s4049_s4, 32768, %s29_s25, [#allocation4], %s3545_s11, %s3545_s11, %s3546_s12  }
  0x12   :  { %3540 = dma.done.wait [#allocation4], 32768  }
  0x13   :  { %3541 = vsyncadd [#allocation4], 4294934528  ;;  %v3613_v0 = vld [vmem:[%s4045_s0] sm:$0xff]  ;;  %s3547_s17 = smov 16   ;;  %s3548_s18 = smov 17   ;;  %v3622_v1 = vld [vmem:[%s4045_s0 + $0x8] sm:$0xff]  ;;  %v52_v7 = vlaneseq }
  0x14   :  { %89 = vrot.lane.b32.xlu1 %v3613_v0, %s3547_s17  ;;  %44 = vrot.lane.b32.xlu0 %v3613_v0, %s3548_s18  ;;  %v3631_v2 = vld [vmem:[%s4045_s0 + $0x18] sm:$0xff]  ;;  %s3549_s22 = smov 15   ;;  %s3550_s23 = smov 1   ;;  %v3649_v3 = vld [vmem:[%s4045_s0 + $0x10] sm:$0xff]  ;;  %v3554_v4 = vmov 0.0   ;;  %v3556_v5 = vmov 0  }
  0x15   :  { %s3551_s26 = smov 127   ;;  %s3552_s27 = smov 113   ;;  %539 = vmatprep.mubr.f32.mxu0 %v3554_v4  ;;  %610 = vmatprep.mubr.f32.mxu1 %v3554_v4  ;;  %v465_v6 = vld [vmem:[%s4047_s2] sm:$0xff]  ;;  %v3677_v8 = vshrl.u32 %v52_v7, 7  ;;  %v3679_v9 = vand.u32 127, %v52_v7  ;;  %vm471_vm8 = vcmask 588800  }
  0x16   :  { %s3553_s28 = smov 112   ;;  %s3555_s0 = smov 111   ;;  %3495 = vset.pattern.permute.xlu0 %v3556_v5  ;;  %v3687_v11 = vld [vmem:[%s4048_s3 + $0x4] sm:$0xf]  ;;  %v3692_v12 = vld [vmem:[%s4048_s3] sm:$0xf] }
  0x17   :  { %v3682_v10 = vsub.s32 1, %v3677_v8  ;;  %vm97_vm0 = vcmp.lt.s32.totalorder %v3679_v9, 16  ;;  %vm54_vm1 = vcmp.lt.s32.totalorder %v3679_v9, 17  ;;  %v3697_v15 = vsub.s32 0, %v3677_v8  ;;  %v3730_v33 = vld [vmem:[%s4048_s3 + $0x8] sm:$0xf] }
  0x18   :  { %91 = vrot.lane.b32.xlu1 %v3622_v1, %s3547_s17  ;;  %46 = vrot.lane.b32.xlu0 %v3622_v1, %s3548_s18  ;;  %v3735_v34 = vld [vmem:[%s4048_s3 + $0xc] sm:$0xf]  ;;  %vm141_vm2 = vcmp.lt.s32.totalorder %v3679_v9, 15  ;;  %vm185_vm3 = vcmp.lt.s32.totalorder %v3679_v9, 1  ;;  %v3756_v44 = vld [vmem:[%s4048_s3 + $0x10] sm:$0xf] }
  0x19   :  { %v68_v16 = vrot.slane %v3692_v12, %v3682_v10  ;;  %v112_v17 = vrot.slane %v3687_v11, %v3682_v10  ;;  %v108_v22 = vrot.slane %v3687_v11, %v3697_v15  ;;  %v64_v23 = vrot.slane %v3692_v12, %v3697_v15  ;;  %v3765_v49 = vld [vmem:[%s4048_s3 + $0x14] sm:$0xf] }
  0x1a   :  { %v156_v38 = vrot.slane %v3730_v33, %v3682_v10  ;;  %v200_v39 = vrot.slane %v3735_v34, %v3682_v10  ;;  %v196_v47 = vrot.slane %v3735_v34, %v3697_v15  ;;  %v152_v48 = vrot.slane %v3730_v33, %v3697_v15 }
  0x1b   :  { %v231_v53 = vrot.slane %v3756_v44, %v3682_v10  ;;  %vm260_vm4 = vcmp.lt.s32.totalorder %v3679_v9, 127  ;;  %v275_v58 = vrot.slane %v3765_v49, %v3682_v10  ;;  %v227_v63 = vrot.slane %v3756_v44, %v3697_v15 }
  0x1c   :  { %95 = vrot.lane.b32.xlu1 %v3631_v2, %s3547_s17  ;;  %50 = vrot.lane.b32.xlu0 %v3631_v2, %s3548_s18  ;;  %vm304_vm5 = vcmp.lt.s32.totalorder %v3679_v9, 113  ;;  %vm348_vm6 = vcmp.lt.s32.totalorder %v3679_v9, 112  ;;  %vm392_vm7 = vcmp.lt.s32.totalorder %v3679_v9, 111  ;;  %v731_v9 = vld [vmem:[#allocation3 + $0x118] sm:$0xff]  ;;  %vm1485_vm9 = vcmask 253952  }
  0x1d   :  { %v245_v62 = vmul.f32 %v231_v53, %v3622_v1 }
  0x20   :  { %135 = vrot.lane.b32.xlu1 %v3622_v1, %s3549_s22  ;;  %133 = vrot.lane.b32.xlu0 %v3613_v0, %s3549_s22 }
  0x24   :  { %179 = vrot.lane.b32.xlu1 %v3622_v1, %s3550_s23  ;;  %177 = vrot.lane.b32.xlu0 %v3613_v0, %s3550_s23 }
  0x28   :  { %183 = vrot.lane.b32.xlu1 %v3631_v2, %s3550_s23  ;;  %139 = vrot.lane.b32.xlu0 %v3631_v2, %s3549_s22 }
  0x2c   :  { %256 = vrot.lane.b32.xlu1 %v3649_v3, %s3551_s26  ;;  %254 = vrot.lane.b32.xlu0 %v3622_v1, %s3551_s26 }
  0x30   :  { %298 = vrot.lane.b32.xlu1 %v3622_v1, %s3552_s27  ;;  %252 = vrot.lane.b32.xlu0 %v3613_v0, %s3551_s26 }
  0x34   :  { %342 = vrot.lane.b32.xlu1 %v3622_v1, %s3553_s28  ;;  %300 = vrot.lane.b32.xlu0 %v3649_v3, %s3552_s27 }
  0x38   :  { %296 = vrot.lane.b32.xlu1 %v3613_v0, %s3552_s27  ;;  %344 = vrot.lane.b32.xlu0 %v3649_v3, %s3553_s28 }
  0x3c   :  { %386 = vrot.lane.b32.xlu1 %v3622_v1, %s3555_s0  ;;  %340 = vrot.lane.b32.xlu0 %v3613_v0, %s3553_s28 }
  0x40   :  { %384 = vrot.lane.b32.xlu1 %v3613_v0, %s3555_s0  ;;  %388 = vrot.lane.b32.xlu0 %v3649_v3, %s3555_s0 }
  0x44   :  { %93 = vrot.lane.b32.xlu1 %v3649_v3, %s3547_s17  ;;  %48 = vrot.lane.b32.xlu0 %v3649_v3, %s3548_s18 }
  0x48   :  { %181 = vrot.lane.b32.xlu1 %v3649_v3, %s3550_s23  ;;  %137 = vrot.lane.b32.xlu0 %v3649_v3, %s3549_s22 }
  0x4c   :  { %302 = vrot.lane.b32.xlu1 %v3631_v2, %s3552_s27  ;;  %258 = vrot.lane.b32.xlu0 %v3631_v2, %s3551_s26 }
  0x50   :  { %390 = vrot.lane.b32.xlu1 %v3631_v2, %s3555_s0  ;;  %346 = vrot.lane.b32.xlu0 %v3631_v2, %s3553_s28 }
  0x54   :  { %468 = vperm.xlu0 %3495, %v465_v6   ;;  %v271_v6 = vrot.slane %v3765_v49, %v3697_v15 }
  0x86   :  { %v90_v13 = vpop.permute.xlu1 %89  ;;  %v45_v14 = vpop.permute.xlu0 %44 }
  0x8a   :  { %v3703_v18 = vpop.permute.xlu1 %91  ;;  %v3705_v19 = vpop.permute.xlu0 %46 }
  0x8b   :  { %v100_v20 = vsel %vm97_vm0, %v90_v13, %v3703_v18  ;;  %v57_v21 = vsel %vm54_vm1, %v45_v14, %v3705_v19 }
  0x8c   :  { %v82_v24 = vmul.f32 %v68_v16, %v57_v21  ;;  %v126_v25 = vmul.f32 %v112_v17, %v100_v20  ;;  %v244_v16 = vmul.f32 %v227_v63, %v3613_v0  ;;  %v3801_v20 = vld [vmem:[%s4048_s3 + $0x18] sm:$0xf]  ;;  %v3806_v21 = vld [vmem:[%s4048_s3 + $0x1c] sm:$0xf] }
  0x8e   :  { %v3717_v26 = vpop.permute.xlu1 %95  ;;  %v3719_v27 = vpop.permute.xlu0 %50  ;;  %v2937_v28 = vpack.c.bf16 %v126_v25, %v82_v24  ;;  %v319_v24 = vrot.slane %v3801_v20, %v3682_v10  ;;  %v363_v25 = vrot.slane %v3806_v21, %v3682_v10 }
  0x8f   :  { %v101_v29 = vsel %vm97_vm0, %v3717_v26, %v90_v13  ;;  %v58_v30 = vsel %vm54_vm1, %v3719_v27, %v45_v14 }
  0x90   :  { %v125_v31 = vmul.f32 %v108_v22, %v101_v29  ;;  %v81_v32 = vmul.f32 %v64_v23, %v58_v30  ;;  %2938 = vmatprep.subr.bf16.mxu0 %v2937_v28 }
  0x92   :  { %v3737_v35 = vpop.permute.xlu1 %135  ;;  %v134_v36 = vpop.permute.xlu0 %133  ;;  %v2939_v37 = vpack.c.bf16 %v125_v31, %v81_v32 }
  0x93   :  { %v144_v40 = vsel %vm141_vm2, %v134_v36, %v3737_v35 }
  0x94   :  { %2940 = vmatpush1.bf16.msra.mxu0 %v2939_v37  ;;  %v170_v45 = vmul.f32 %v156_v38, %v144_v40  ;;  %v359_v38 = vrot.slane %v3806_v21, %v3697_v15  ;;  %v3836_v40 = vld [vmem:[%s4048_s3 + $0x20] sm:$0xf] }
  0x96   :  { %v3748_v41 = vpop.permute.xlu1 %179  ;;  %v178_v42 = vpop.permute.xlu0 %177 }
  0x97   :  { %v188_v43 = vsel %vm185_vm3, %v178_v42, %v3748_v41 }
  0x98   :  { %v214_v46 = vmul.f32 %v200_v39, %v188_v43 }
  0x9a   :  { %v3767_v50 = vpop.permute.xlu1 %183  ;;  %v3769_v51 = vpop.permute.xlu0 %139  ;;  %v2941_v52 = vpack.c.bf16 %v214_v46, %v170_v45  ;;  %v3841_v46 = vsub.s32 2, %v3677_v8 }
  0x9b   :  { %v189_v54 = vsel %vm185_vm3, %v3767_v50, %v178_v42  ;;  %v145_v55 = vsel %vm141_vm2, %v3769_v51, %v134_v36  ;;  %v315_v36 = vrot.slane %v3801_v20, %v3697_v15 }
  0x9c   :  { %v213_v56 = vmul.f32 %v196_v47, %v189_v54  ;;  %v169_v57 = vmul.f32 %v152_v48, %v145_v55  ;;  %2942 = vmatprep.subr.bf16.mxu0 %v2941_v52  ;;  %v3847_v48 = vsub.s32 3, %v3677_v8  ;;  %v407_v54 = vrot.slane %v3836_v40, %v3682_v10 }
  0x9d   :  { %v403_v55 = vrot.slane %v3836_v40, %v3697_v15  ;;  %v116_v8 = vrot.slane %v3687_v11, %v3841_v46  ;;  %v72_v15 = vrot.slane %v3692_v12, %v3841_v46 }
  0x9e   :  { %v3782_v59 = vpop.permute.xlu1 %256  ;;  %v255_v60 = vpop.permute.xlu0 %254  ;;  %v2943_v61 = vpack.c.bf16 %v213_v56, %v169_v57 }
  0x9f   :  { %v262_v4 = vsel %vm260_vm4, %v255_v60, %v3782_v59 }
  0xa0   :  { %v289_v5 = vmul.f32 %v275_v58, %v262_v4  ;;  %2944 = vmatpush1.bf16.msra.mxu0 %v2943_v61  ;;  %v641_v61 = vld [vmem:[#allocation3 + $0x88] sm:$0xff]  ;;  %v76_v4 = vrot.slane %v3692_v12, %v3847_v48  ;;  %v164_v12 = vrot.slane %v3730_v33, %v3847_v48 }
  0xa2   :  { %v299_v7 = vpop.permute.xlu1 %298  ;;  %v3792_v13 = vpop.permute.xlu0 %252  ;;  %v2945_v14 = vpack.c.bf16 %v289_v5, %v245_v62  ;;  %v624_v62 = vld [vmem:[#allocation3] sm:$0xff]  ;;  %v625_v5 = vld [vmem:[#allocation3 + $0x8] sm:$0xff] }
  0xa3   :  { %v263_v1 = vsel %vm260_vm4, %v3792_v13, %v255_v60  ;;  %v640_v60 = vld [vmem:[#allocation3 + $0x80] sm:$0xff] }
  0xa4   :  { %v288_v17 = vmul.f32 %v271_v6, %v263_v1  ;;  %2946 = vmatprep.subr.bf16.mxu0 %v2945_v14  ;;  %v642_v6 = vld [vmem:[#allocation3 + $0x90] sm:$0xff]  ;;  %v120_v1 = vrot.slane %v3687_v11, %v3847_v48  ;;  %v279_v11 = vrot.slane %v3765_v49, %v3841_v46 }
  0xa6   :  { %v343_v22 = vpop.permute.xlu1 %342  ;;  %v3809_v0 = vpop.permute.xlu0 %300  ;;  %v2947_v23 = vpack.c.bf16 %v288_v17, %v244_v16  ;;  %v204_v16 = vrot.slane %v3735_v34, %v3841_v46  ;;  %v208_v17 = vrot.slane %v3735_v34, %v3847_v48  ;;  %v2971_v34 = vpack.c.bf16 %v625_v5, %v624_v62 }
  0xa7   :  { %v306_v28 = vsel %vm304_vm5, %v299_v7, %v3809_v0 }
  0xa8   :  { %2948 = vmatpush1.bf16.msra.mxu0 %v2947_v23  ;;  %v333_v32 = vmul.f32 %v319_v24, %v306_v28  ;;  %v2969_v23 = vpack.c.bf16 %v641_v61, %v640_v60 }
  0xaa   :  { %v3819_v29 = vpop.permute.xlu1 %296  ;;  %v3821_v30 = vpop.permute.xlu0 %344 }
  0xab   :  { %v350_v31 = vsel %vm348_vm6, %v343_v22, %v3821_v30  ;;  %v307_v39 = vsel %vm304_vm5, %v3819_v29, %v299_v7  ;;  %v643_v7 = vld [vmem:[#allocation3 + $0x98] sm:$0xff] }
  0xac   :  { %v377_v37 = vmul.f32 %v363_v25, %v350_v31  ;;  %v332_v52 = vmul.f32 %v315_v36, %v307_v39  ;;  %v3883_v31 = vld [vmem:[%s4046_s1] sm:$0xff]  ;;  %v626_v36 = vld [vmem:[#allocation3 + $0x10] sm:$0xff] }
  0xae   :  { %v387_v42 = vpop.permute.xlu1 %386  ;;  %v3838_v43 = vpop.permute.xlu0 %340  ;;  %v2949_v45 = vpack.c.bf16 %v377_v37, %v333_v32  ;;  %v2973_v32 = vpack.c.bf16 %v643_v7, %v642_v6 }
  0xaf   :  { %v351_v47 = vsel %vm348_vm6, %v3838_v43, %v343_v22  ;;  %v160_v22 = vrot.slane %v3730_v33, %v3841_v46 }
  0xb0   :  { %v376_v53 = vmul.f32 %v359_v38, %v351_v47  ;;  %2950 = vmatprep.subr.bf16.mxu0 %v2949_v45  ;;  %v644_v45 = vld [vmem:[#allocation3 + $0xa0] sm:$0xff]  ;;  %v645_v47 = vld [vmem:[#allocation3 + $0xa8] sm:$0xff] }
  0xb1   :  { %v2977_v62 = vpack.c.bf16 %v645_v47, %v644_v45 }
  0xb2   :  { %v3854_v56 = vpop.permute.xlu1 %384  ;;  %v3856_v57 = vpop.permute.xlu0 %388  ;;  %v2951_v58 = vpack.c.bf16 %v376_v53, %v332_v52 }
  0xb3   :  { %v395_v63 = vsel %vm392_vm7, %v3854_v56, %v387_v42  ;;  %v394_v10 = vsel %vm392_vm7, %v387_v42, %v3856_v57  ;;  %v627_v42 = vld [vmem:[#allocation3 + $0x18] sm:$0xff] }
  0xb4   :  { %v421_v14 = vmul.f32 %v407_v54, %v394_v10  ;;  %2952 = vmatpush1.bf16.msra.mxu0 %v2951_v58  ;;  %v420_v24 = vmul.f32 %v403_v55, %v395_v63  ;;  %v2975_v61 = vpack.c.bf16 %v627_v42, %v626_v36 }
  0xb6   :  { %v94_v25 = vpop.permute.xlu1 %93  ;;  %v49_v28 = vpop.permute.xlu0 %48  ;;  %491 = vmatprep.subr.mxu0 %v421_v14 }
  0xb7   :  { %v98_v33 = vsel %vm97_vm0, %v94_v25, %v3717_v26  ;;  %v99_v37 = vsel %vm97_vm0, %v3703_v18, %v94_v25  ;;  %v55_v38 = vsel %vm54_vm1, %v49_v28, %v3719_v27  ;;  %v56_v39 = vsel %vm54_vm1, %v3705_v19, %v49_v28 }
  0xb8   :  { %v127_v52 = vmul.f32 %v116_v8, %v99_v37  ;;  %v83_v53 = vmul.f32 %v72_v15, %v56_v39  ;;  %492 = vmatpush1.msra.mxu0 %v420_v24  ;;  %v84_v54 = vmul.f32 %v76_v4, %v55_v38  ;;  %v128_v26 = vmul.f32 %v120_v1, %v98_v33  ;;  %v628_v15 = vld [vmem:[#allocation3 + $0x20] sm:$0xff]  ;;  %v629_v4 = vld [vmem:[#allocation3 + $0x28] sm:$0xff]  ;;  %v647_v1 = vld [vmem:[#allocation3 + $0xb8] sm:$0xff] }
  0xb9   :  { %2373 = vmatmul.mubr.msk.f32.vlgmr.msra.gmra.mrb[0].mxu0 %vm471_vm8, %v3883_v31  ;;  %v283_v18 = vrot.slane %v3765_v49, %v3847_v48  ;;  %v239_v27 = vrot.slane %v3756_v44, %v3847_v48  ;;  %v235_v19 = vrot.slane %v3756_v44, %v3841_v46  ;;  %2970 = vmatprep.subr.bf16.mxu0 %v2969_v23  ;;  %v648_v37 = vld [vmem:[#allocation3 + $0xc0] sm:$0xff]  ;;  %v649_v38 = vld [vmem:[#allocation3 + $0xc8] sm:$0xff] }
  0xba   :  { %v182_v55 = vpop.permute.xlu1 %181  ;;  %v138_v58 = vpop.permute.xlu0 %137  ;;  %v2953_v8 = vpack.c.bf16 %v128_v26, %v84_v54  ;;  %v2955_v60 = vpack.c.bf16 %v127_v52, %v83_v53  ;;  %2972 = vmatpush3.bf16.msra.mxu0 %v2971_v34  ;;  %v630_v34 = vld [vmem:[#allocation3 + $0x30] sm:$0xff]  ;;  %v632_v53 = vld [vmem:[#allocation3 + $0x40] sm:$0xff]  ;;  %v633_v54 = vld [vmem:[#allocation3 + $0x48] sm:$0xff] }
  0xbb   :  { %v186_v63 = vsel %vm185_vm3, %v182_v55, %v3767_v50  ;;  %v187_v49 = vsel %vm185_vm3, %v3748_v41, %v182_v55  ;;  %v142_v44 = vsel %vm141_vm2, %v138_v58, %v3769_v51  ;;  %v143_v10 = vsel %vm141_vm2, %v3737_v35, %v138_v58  ;;  %2974 = vmatprep.subr.bf16.mxu0 %v2973_v32  ;;  %v646_v50 = vld [vmem:[#allocation3 + $0xb0] sm:$0xff]  ;;  %v631_v32 = vld [vmem:[#allocation3 + $0x38] sm:$0xff] }
  0xbc   :  { %v215_v5 = vmul.f32 %v204_v16, %v187_v49  ;;  %v216_v6 = vmul.f32 %v208_v17, %v186_v63  ;;  %v171_v7 = vmul.f32 %v160_v22, %v143_v10  ;;  %v172_v14 = vmul.f32 %v164_v12, %v142_v44  ;;  %2954 = vmatprep.subr.bf16.mxu1 %v2953_v8  ;;  %v650_v55 = vld [vmem:[#allocation3 + $0xd0] sm:$0xff]  ;;  %v651_v58 = vld [vmem:[#allocation3 + $0xd8] sm:$0xff]  ;;  %v728_v63 = vld [vmem:[#allocation3 + $0x100] sm:$0xff] }
  0xbd   :  { %2956 = vmatpush1.bf16.msra.mxu1 %v2955_v60  ;;  %v323_v41 = vrot.slane %v3801_v20, %v3841_v46  ;;  %v247_v51 = vmul.f32 %v239_v27, %v3631_v2  ;;  %v246_v28 = vmul.f32 %v235_v19, %v3649_v3  ;;  %v2979_v16 = vpack.c.bf16 %v629_v4, %v628_v15  ;;  %v744_v60 = vld [vmem:[#allocation3 + $0x180] sm:$0xff]  ;;  %v729_v49 = vld [vmem:[#allocation3 + $0x108] sm:$0xff]  ;;  %v634_v4 = vld [vmem:[#allocation3 + $0x50] sm:$0xff] }
  0xbe   :  { %v303_v23 = vpop.permute.xlu1 %302  ;;  %v259_v24 = vpop.permute.xlu0 %258  ;;  %v2957_v25 = vpack.c.bf16 %v216_v6, %v172_v14  ;;  %v2959_v35 = vpack.c.bf16 %v215_v5, %v171_v7  ;;  %2976 = vmatpush3.bf16.msra.mxu0 %v2975_v61  ;;  %v327_v17 = vrot.slane %v3801_v20, %v3847_v48  ;;  %v2981_v2 = vpack.c.bf16 %v647_v1, %v646_v50  ;;  %v635_v5 = vld [vmem:[#allocation3 + $0x58] sm:$0xff]  ;;  %v652_v7 = vld [vmem:[#allocation3 + $0xe0] sm:$0xff]  ;;  %v653_v14 = vld [vmem:[#allocation3 + $0xe8] sm:$0xff] }
  0xbf   :  { %v261_v22 = vsel %vm260_vm4, %v3782_v59, %v259_v24  ;;  %v264_v12 = vsel %vm260_vm4, %v259_v24, %v3792_v13  ;;  %2978 = vmatprep.subr.bf16.mxu0 %v2977_v62  ;;  %v367_v3 = vrot.slane %v3806_v21, %v3841_v46  ;;  %v371_v20 = vrot.slane %v3806_v21, %v3847_v48  ;;  %v745_v62 = vld [vmem:[#allocation3 + $0x188] sm:$0xff]  ;;  %v747_v6 = vld [vmem:[#allocation3 + $0x198] sm:$0xff]  ;;  %v730_v1 = vld [vmem:[#allocation3 + $0x110] sm:$0xff] }
  0xc0   :  { %v290_v36 = vmul.f32 %v279_v11, %v261_v22  ;;  %v291_v33 = vmul.f32 %v283_v18, %v264_v12  ;;  %2958 = vmatprep.subr.bf16.mxu1 %v2957_v25  ;;  %v305_v59 = vsel %vm304_vm5, %v3809_v0, %v303_v23  ;;  %v308_v13 = vsel %vm304_vm5, %v303_v23, %v3819_v29  ;;  %v636_v23 = vld [vmem:[#allocation3 + $0x60] sm:$0xff]  ;;  %v637_v24 = vld [vmem:[#allocation3 + $0x68] sm:$0xff] }
  0xc1   :  { %2960 = vmatpush1.bf16.msra.mxu1 %v2959_v35  ;;  %v2983_v47 = vpack.c.bf16 %v631_v32, %v630_v34  ;;  %v415_v21 = vrot.slane %v3836_v40, %v3847_v48  ;;  %v2985_v29 = vpack.c.bf16 %v649_v38, %v648_v37  ;;  %v334_v26 = vmul.f32 %v323_v41, %v305_v59  ;;  %v748_v25 = vld [vmem:[#allocation3 + $0x1a0] sm:$0xff]  ;;  %v749_v35 = vld [vmem:[#allocation3 + $0x1a8] sm:$0xff]  ;;  %v751_v34 = vld [vmem:[#allocation3 + $0x1b8] sm:$0xff] }
  0xc2   :  { %v391_v11 = vpop.permute.xlu1 %390  ;;  %v347_v39 = vpop.permute.xlu0 %346  ;;  %v2961_v42 = vpack.c.bf16 %v291_v33, %v247_v51  ;;  %v2963_v45 = vpack.c.bf16 %v290_v36, %v246_v28  ;;  %2980 = vmatpush3.bf16.msra.mxu0 %v2979_v16  ;;  %v335_v18 = vmul.f32 %v327_v17, %v308_v13  ;;  %v411_v61 = vrot.slane %v3836_v40, %v3841_v46  ;;  %v732_v22 = vld [vmem:[#allocation3 + $0x120] sm:$0xff]  ;;  %v733_v12 = vld [vmem:[#allocation3 + $0x128] sm:$0xff]  ;;  %v734_v33 = vld [vmem:[#allocation3 + $0x130] sm:$0xff] }
  0xc3   :  { %v349_v52 = vsel %vm348_vm6, %v3821_v30, %v347_v39  ;;  %v352_v0 = vsel %vm348_vm6, %v347_v39, %v3838_v43  ;;  %2982 = vmatprep.subr.bf16.mxu0 %v2981_v2  ;;  %v396_v48 = vsel %vm392_vm7, %v391_v11, %v3854_v56  ;;  %v2987_v43 = vpack.c.bf16 %v633_v54, %v632_v53  ;;  %v746_v56 = vld [vmem:[#allocation3 + $0x190] sm:$0xff]  ;;  %v736_v59 = vld [vmem:[#allocation3 + $0x140] sm:$0xff]  ;;  %v737_v13 = vld [vmem:[#allocation3 + $0x148] sm:$0xff] }
  0xc4   :  { %v378_v27 = vmul.f32 %v367_v3, %v349_v52  ;;  %v379_v19 = vmul.f32 %v371_v20, %v352_v0  ;;  %2962 = vmatprep.subr.bf16.mxu1 %v2961_v42  ;;  %v2989_v44 = vpack.c.bf16 %v651_v58, %v650_v55  ;;  %v393_v10 = vsel %vm392_vm7, %v3856_v57, %v391_v11  ;;  %v750_v2 = vld [vmem:[#allocation3 + $0x1b0] sm:$0xff]  ;;  %v735_v3 = vld [vmem:[#allocation3 + $0x138] sm:$0xff]  ;;  %v753_v20 = vld [vmem:[#allocation3 + $0x1c8] sm:$0xff] }
  0xc5   :  { %2964 = vmatpush1.bf16.msra.mxu1 %v2963_v45  ;;  %v423_v15 = vmul.f32 %v415_v21, %v396_v48  ;;  %v3001_v40 = vpack.c.bf16 %v745_v62, %v744_v60  ;;  %v422_v46 = vmul.f32 %v411_v61, %v393_v10  ;;  %v3003_v50 = vpack.c.bf16 %v729_v49, %v728_v63  ;;  %v754_v11 = vld [vmem:[#allocation3 + $0x1d0] sm:$0xff]  ;;  %v755_v39 = vld [vmem:[#allocation3 + $0x1d8] sm:$0xff]  ;;  %v756_v52 = vld [vmem:[#allocation3 + $0x1e0] sm:$0xff] }
  0xc6   :  { %v2965_v30 = vpack.c.bf16 %v379_v19, %v335_v18  ;;  %v2967_v8 = vpack.c.bf16 %v378_v27, %v334_v26  ;;  %2984 = vmatpush3.bf16.msra.mxu0 %v2983_v47  ;;  %v2991_v41 = vpack.c.bf16 %v635_v5, %v634_v4  ;;  %v3005_v51 = vpack.c.bf16 %v747_v6, %v746_v56  ;;  %v738_v47 = vld [vmem:[#allocation3 + $0x150] sm:$0xff]  ;;  %v739_v21 = vld [vmem:[#allocation3 + $0x158] sm:$0xff]  ;;  %v757_v0 = vld [vmem:[#allocation3 + $0x1e8] sm:$0xff] }
  0xc7   :  { %2986 = vmatprep.subr.bf16.mxu0 %v2985_v29  ;;  %v2993_v57 = vpack.c.bf16 %v653_v14, %v652_v7  ;;  %v3007_v28 = vpack.c.bf16 %v731_v9, %v730_v1  ;;  %v2995_v16 = vpack.c.bf16 %v637_v24, %v636_v23  ;;  %v3009_v17 = vpack.c.bf16 %v749_v35, %v748_v25  ;;  %v740_v54 = vld [vmem:[#allocation3 + $0x160] sm:$0xff]  ;;  %v741_v26 = vld [vmem:[#allocation3 + $0x168] sm:$0xff]  ;;  %v654_v27 = vld [vmem:[#allocation3 + $0xf0] sm:$0xff] }
  0xc8   :  { %2966 = vmatprep.subr.bf16.mxu1 %v2965_v30  ;;  %v3011_v32 = vpack.c.bf16 %v733_v12, %v732_v22  ;;  %v3013_v36 = vpack.c.bf16 %v751_v34, %v750_v2  ;;  %v3015_v37 = vpack.c.bf16 %v735_v3, %v734_v33  ;;  %v3019_v42 = vpack.c.bf16 %v737_v13, %v736_v59  ;;  %v655_v19 = vld [vmem:[#allocation3 + $0xf8] sm:$0xff]  ;;  %v638_v58 = vld [vmem:[#allocation3 + $0x70] sm:$0xff]  ;;  %v854_v49 = vld [vmem:[#allocation3 + $0x280] sm:$0xff] }
  0xc9   :  { %2968 = vmatpush1.bf16.msra.mxu1 %v2967_v8  ;;  %v3021_v45 = vpack.c.bf16 %v755_v39, %v754_v11  ;;  %v3023_v29 = vpack.c.bf16 %v739_v21, %v738_v47  ;;  %v3025_v53 = vpack.c.bf16 %v757_v0, %v756_v52  ;;  %v3027_v18 = vpack.c.bf16 %v741_v26, %v740_v54  ;;  %v639_v48 = vld [vmem:[#allocation3 + $0x78] sm:$0xff]  ;;  %v758_v8 = vld [vmem:[#allocation3 + $0x1f0] sm:$0xff]  ;;  %v963_v56 = vld [vmem:[#allocation3 + $0x388] sm:$0xff] }
  0xca   :  { %562 = vmatprep.subr.mxu1 %v423_v15  ;;  %2988 = vmatpush3.bf16.msra.mxu0 %v2987_v43  ;;  %v2997_v55 = vpack.c.bf16 %v655_v19, %v654_v27  ;;  %v2999_v30 = vpack.c.bf16 %v639_v48, %v638_v58  ;;  %v759_v60 = vld [vmem:[#allocation3 + $0x1f8] sm:$0xff]  ;;  %v742_v61 = vld [vmem:[#allocation3 + $0x170] sm:$0xff]  ;;  %v962_v15 = vld [vmem:[#allocation3 + $0x380] sm:$0xff] }
  0xcb   :  { %2990 = vmatprep.subr.bf16.mxu0 %v2989_v44  ;;  %v3029_v43 = vpack.c.bf16 %v759_v60, %v758_v8  ;;  %v743_v62 = vld [vmem:[#allocation3 + $0x178] sm:$0xff]  ;;  %v855_v44 = vld [vmem:[#allocation3 + $0x288] sm:$0xff]  ;;  %v3065_v4 = vpack.c.bf16 %v963_v56, %v962_v15  ;;  %v946_v1 = vld [vmem:[#allocation3 + $0x300] sm:$0xff] }
  0xcc   :  { %v3031_v63 = vpack.c.bf16 %v743_v62, %v742_v61  ;;  %v3033_v10 = vpack.c.bf16 %v855_v44, %v854_v49  ;;  %v856_v9 = vld [vmem:[#allocation3 + $0x290] sm:$0xff]  ;;  %v965_v35 = vld [vmem:[#allocation3 + $0x398] sm:$0xff]  ;;  %v858_v34 = vld [vmem:[#allocation3 + $0x2a0] sm:$0xff] }
  0xcd   :  { %563 = vmatpush1.msra.mxu1 %v422_v46  ;;  %v839_v46 = vld [vmem:[#allocation3 + $0x208] sm:$0xff]  ;;  %v964_v25 = vld [vmem:[#allocation3 + $0x390] sm:$0xff]  ;;  %v842_v11 = vld [vmem:[#allocation3 + $0x220] sm:$0xff] }
  0xce   :  { %2374 = vmatmul.mubr.msk.f32.vlgmr.msra.gmra.mrb[0].mxu1 %vm471_vm8, %v3883_v31  ;;  %3002 = vmatprep.subr.bf16.mxu1 %v3001_v40  ;;  %v752_v31 = vld [vmem:[#allocation3 + $0x1c0] sm:$0xff]  ;;  %v3069_v33 = vpack.c.bf16 %v965_v35, %v964_v25  ;;  %v948_v3 = vld [vmem:[#allocation3 + $0x310] sm:$0xff]  ;;  %v843_v39 = vld [vmem:[#allocation3 + $0x228] sm:$0xff] }
  0xcf   :  { %3004 = vmatpush3.bf16.msra.mxu1 %v3003_v50  ;;  %2992 = vmatpush3.bf16.msra.mxu0 %v2991_v41  ;;  %v3017_v38 = vpack.c.bf16 %v753_v20, %v752_v31  ;;  %v838_v40 = vld [vmem:[#allocation3 + $0x200] sm:$0xff]  ;;  %v949_v31 = vld [vmem:[#allocation3 + $0x318] sm:$0xff]  ;;  %v951_v0 = vld [vmem:[#allocation3 + $0x328] sm:$0xff] }
  0xd0   :  { %3006 = vmatprep.subr.bf16.mxu1 %v3005_v51  ;;  %2994 = vmatprep.subr.bf16.mxu0 %v2993_v57  ;;  %v947_v51 = vld [vmem:[#allocation3 + $0x308] sm:$0xff]  ;;  %v857_v57 = vld [vmem:[#allocation3 + $0x298] sm:$0xff]  ;;  %v3035_v24 = vpack.c.bf16 %v839_v46, %v838_v40  ;;  %v950_v52 = vld [vmem:[#allocation3 + $0x320] sm:$0xff] }
  0xd1   :  { %v3067_v12 = vpack.c.bf16 %v947_v51, %v946_v1  ;;  %v3037_v2 = vpack.c.bf16 %v857_v57, %v856_v9  ;;  %v861_v47 = vld [vmem:[#allocation3 + $0x2b8] sm:$0xff]  ;;  %v3075_v19 = vpack.c.bf16 %v951_v0, %v950_v52  ;;  %v863_v58 = vld [vmem:[#allocation3 + $0x2c8] sm:$0xff]  ;;  %v848_v1 = vld [vmem:[#allocation3 + $0x250] sm:$0xff] }
  0xd2   :  { %v969_v54 = vld [vmem:[#allocation3 + $0x3b8] sm:$0xff]  ;;  %v971_v61 = vld [vmem:[#allocation3 + $0x3c8] sm:$0xff]  ;;  %v866_v25 = vld [vmem:[#allocation3 + $0x2e0] sm:$0xff] }
  0xd3   :  { %3008 = vmatpush3.bf16.msra.mxu1 %v3007_v28  ;;  %2996 = vmatpush3.bf16.msra.mxu0 %v2995_v16  ;;  %v3959_v5 = vpop.permute.xlu0 %468  ;;  %v840_v28 = vld [vmem:[#allocation3 + $0x210] sm:$0xff]  ;;  %v841_v16 = vld [vmem:[#allocation3 + $0x218] sm:$0xff]  ;;  %v847_v49 = vld [vmem:[#allocation3 + $0x248] sm:$0xff] }
  0xd4   :  { %3010 = vmatprep.subr.bf16.mxu1 %v3009_v17  ;;  %2998 = vmatprep.subr.bf16.mxu0 %v2997_v55  ;;  %v3039_v20 = vpack.c.bf16 %v841_v16, %v840_v28  ;;  %v845_v27 = vld [vmem:[#allocation3 + $0x238] sm:$0xff]  ;;  %v862_v55 = vld [vmem:[#allocation3 + $0x2c0] sm:$0xff]  ;;  %v867_v35 = vld [vmem:[#allocation3 + $0x2e8] sm:$0xff] }
  0xd5   :  { %v953_v8 = vld [vmem:[#allocation3 + $0x338] sm:$0xff]  ;;  %v3049_v62 = vpack.c.bf16 %v863_v58, %v862_v55  ;;  %v1071_v52 = vld [vmem:[#allocation3 + $0x488] sm:$0xff] }
  0xd6   :  { %v865_v15 = vld [vmem:[#allocation3 + $0x2d8] sm:$0xff]  ;;  %v1055_v55 = vld [vmem:[#allocation3 + $0x408] sm:$0xff] }
  0xd7   :  { %3012 = vmatpush3.bf16.msra.mxu1 %v3011_v32  ;;  %3000 = vmatpush3.bf16.msra.mxu0 %v2999_v30  ;;  %v859_v32 = vld [vmem:[#allocation3 + $0x2a8] sm:$0xff]  ;;  %v952_v30 = vld [vmem:[#allocation3 + $0x330] sm:$0xff]  ;;  %v973_v40 = vld [vmem:[#allocation3 + $0x3d8] sm:$0xff] }
  0xd8   :  { %3014 = vmatprep.subr.bf16.mxu1 %v3013_v36  ;;  %3034 = vmatprep.subr.bf16.mxu0 %v3033_v10  ;;  %v3041_v13 = vpack.c.bf16 %v859_v32, %v858_v34  ;;  %v3079_v44 = vpack.c.bf16 %v953_v8, %v952_v30  ;;  %v864_v10 = vld [vmem:[#allocation3 + $0x2d0] sm:$0xff]  ;;  %v849_v51 = vld [vmem:[#allocation3 + $0x258] sm:$0xff]  ;;  %v975_v34 = vld [vmem:[#allocation3 + $0x3e8] sm:$0xff] }
  0xd9   :  { %v850_v32 = vld [vmem:[#allocation3 + $0x260] sm:$0xff]  ;;  %v1073_v30 = vld [vmem:[#allocation3 + $0x498] sm:$0xff] }
  0xdb   :  { %3016 = vmatpush3.bf16.msra.mxu1 %v3015_v37  ;;  %v966_v37 = vld [vmem:[#allocation3 + $0x3a0] sm:$0xff] }
  0xdc   :  { %3018 = vmatprep.subr.bf16.mxu1 %v3017_v38  ;;  %v967_v38 = vld [vmem:[#allocation3 + $0x3a8] sm:$0xff] }
  0xdd   :  { %v3073_v21 = vpack.c.bf16 %v967_v38, %v966_v37  ;;  %v958_v37 = vld [vmem:[#allocation3 + $0x360] sm:$0xff]  ;;  %v959_v38 = vld [vmem:[#allocation3 + $0x368] sm:$0xff] }
  0xdf   :  { %3020 = vmatpush3.bf16.msra.mxu1 %v3019_v42  ;;  %v3071_v42 = vpack.c.bf16 %v949_v31, %v948_v3  ;;  %v868_v3 = vld [vmem:[#allocation3 + $0x2f0] sm:$0xff]  ;;  %v869_v31 = vld [vmem:[#allocation3 + $0x2f8] sm:$0xff] }
  0xe0   :  { %3022 = vmatprep.subr.bf16.mxu1 %v3021_v45  ;;  %v860_v45 = vld [vmem:[#allocation3 + $0x2b0] sm:$0xff] }
  0xe1   :  { %v3045_v26 = vpack.c.bf16 %v861_v47, %v860_v45  ;;  %v853_v45 = vld [vmem:[#allocation3 + $0x278] sm:$0xff]  ;;  %v3091_v47 = vpack.c.bf16 %v959_v38, %v958_v37  ;;  %v1078_v38 = vld [vmem:[#allocation3 + $0x4c0] sm:$0xff] }
  0xe3   :  { %3024 = vmatpush3.bf16.msra.mxu1 %v3023_v29  ;;  %v3043_v29 = vpack.c.bf16 %v843_v39, %v842_v11  ;;  %v977_v11 = vld [vmem:[#allocation3 + $0x3f8] sm:$0xff]  ;;  %v3061_v39 = vpack.c.bf16 %v869_v31, %v868_v3  ;;  %v1060_v31 = vld [vmem:[#allocation3 + $0x430] sm:$0xff] }
  0xe4   :  { %3026 = vmatprep.subr.bf16.mxu1 %v3025_v53  ;;  %v968_v53 = vld [vmem:[#allocation3 + $0x3b0] sm:$0xff] }
  0xe5   :  { %v3077_v48 = vpack.c.bf16 %v969_v54, %v968_v53  ;;  %v961_v53 = vld [vmem:[#allocation3 + $0x378] sm:$0xff] }
  0xe7   :  { %3028 = vmatpush3.bf16.msra.mxu1 %v3027_v18  ;;  %v844_v18 = vld [vmem:[#allocation3 + $0x230] sm:$0xff] }
  0xe8   :  { %3030 = vmatprep.subr.bf16.mxu1 %v3029_v43  ;;  %v3047_v60 = vpack.c.bf16 %v845_v27, %v844_v18  ;;  %v970_v43 = vld [vmem:[#allocation3 + $0x3c0] sm:$0xff]  ;;  %v1179_v18 = vld [vmem:[#allocation3 + $0x588] sm:$0xff] }
  0xe9   :  { %v3081_v56 = vpack.c.bf16 %v971_v61, %v970_v43  ;;  %v1163_v43 = vld [vmem:[#allocation3 + $0x508] sm:$0xff] }
  0xeb   :  { %3032 = vmatpush3.bf16.msra.mxu1 %v3031_v63  ;;  %v846_v63 = vld [vmem:[#allocation3 + $0x240] sm:$0xff] }
  0xec   :  { %3066 = vmatprep.subr.bf16.mxu1 %v3065_v4  ;;  %v954_v4 = vld [vmem:[#allocation3 + $0x340] sm:$0xff] }
 0x18c   :  { %v541_v6 = vpop.f32.mrb[0].mxu0 }
 0x18d   :  { %v542_v7 = vadd.f32 %v541_v6, %v3959_v5  ;;  %v543_v14 = vpop.f32.mrb[1].mxu0  ;;  %v955_v6 = vld [vmem:[#allocation3 + $0x348] sm:$0xff] }
 0x18e   :  { %v544_v50 = vadd.f32 %v543_v14, %v3959_v5  ;;  %v972_v14 = vld [vmem:[#allocation3 + $0x3d0] sm:$0xff] }
 0x18f   :  { %v3963_v41 = vmax.f32 %v542_v7, 0.0  ;;  %621 = vst [vmem:[%s4051_s6] sm:$0xff] %v542_v7  ;;  %v3051_v7 = vpack.c.bf16 %v847_v49, %v846_v63  ;;  %v3085_v16 = vpack.c.bf16 %v973_v40, %v972_v14  ;;  %v1181_v63 = vld [vmem:[#allocation3 + $0x598] sm:$0xff] }
 0x190   :  { %v3968_v23 = vmax.f32 %v544_v50, 0.0  ;;  %622 = vst [vmem:[%s4051_s6 + $0x8] sm:$0xff] %v544_v50  ;;  %v3053_v50 = vpack.c.bf16 %v865_v15, %v864_v10  ;;  %v1056_v10 = vld [vmem:[#allocation3 + $0x410] sm:$0xff]  ;;  %v1057_v15 = vld [vmem:[#allocation3 + $0x418] sm:$0xff] }
 0x191   :  { %v762_v36 = vrot.slane %v3963_v41, 1  ;;  %v870_v49 = vrot.slane %v3963_v41, 2  ;;  %v978_v14 = vrot.slane %v3963_v41, 3 }
 0x192   :  { %720 = vmatprep.mubr.f32.mxu0 %v3968_v23  ;;  %v763_v17 = vrot.slane %v3968_v23, 1  ;;  %v871_v22 = vrot.slane %v3968_v23, 2  ;;  %v979_v59 = vrot.slane %v3968_v23, 3 }
 0x193   :  { %721 = vmatmul.mubr.f32.vlgmr.msra.gmra.mrb[2].mxu0 %v3963_v41 }
 0x194   :  { %3036 = vmatpush3.bf16.msra.mxu0 %v3035_v24  ;;  %830 = vmatprep.mubr.f32.mxu1 %v763_v17  ;;  %v3083_v24 = vpack.c.bf16 %v955_v6, %v954_v4  ;;  %v956_v17 = vld [vmem:[#allocation3 + $0x350] sm:$0xff]  ;;  %v1074_v6 = vld [vmem:[#allocation3 + $0x4a0] sm:$0xff] }
 0x195   :  { %938 = vmatprep.mubr.f32.mxu0 %v871_v22  ;;  %831 = vmatmul.mubr.f32.vlgmr.msra.gmra.mrb[2].mxu1 %v762_v36  ;;  %v957_v22 = vld [vmem:[#allocation3 + $0x358] sm:$0xff]  ;;  %v851_v36 = vld [vmem:[#allocation3 + $0x268] sm:$0xff] }
 0x196   :  { %3068 = vmatpush3.bf16.msra.mxu1 %v3067_v12  ;;  %3038 = vmatprep.subr.bf16.mxu0 %v3037_v2  ;;  %v3055_v12 = vpack.c.bf16 %v849_v51, %v848_v1  ;;  %v974_v2 = vld [vmem:[#allocation3 + $0x3e0] sm:$0xff]  ;;  %v1195_v1 = vrot.slane %v3968_v23, 5  ;;  %v3103_v51 = vpack.c.bf16 %v1057_v15, %v1056_v10  ;;  %v1191_v15 = vld [vmem:[#allocation3 + $0x5e8] sm:$0xff] }
 0x197   :  { %1046 = vmatprep.mubr.f32.mxu1 %v979_v59  ;;  %3070 = vmatprep.subr.bf16.mxu1 %v3069_v33  ;;  %v3087_v33 = vpack.c.bf16 %v957_v22, %v956_v17  ;;  %v3059_v59 = vpack.c.bf16 %v851_v36, %v850_v32  ;;  %v1076_v22 = vld [vmem:[#allocation3 + $0x4b0] sm:$0xff]  ;;  %v1190_v10 = vld [vmem:[#allocation3 + $0x5e0] sm:$0xff] }
 0x198   :  { %3040 = vmatpush3.bf16.msra.mxu0 %v3039_v20  ;;  %v3089_v20 = vpack.c.bf16 %v975_v34, %v974_v2  ;;  %v1166_v34 = vld [vmem:[#allocation3 + $0x520] sm:$0xff]  ;;  %v1184_v36 = vld [vmem:[#allocation3 + $0x5b0] sm:$0xff] }
 0x199   :  { %3042 = vmatprep.subr.bf16.mxu0 %v3041_v13  ;;  %v976_v13 = vld [vmem:[#allocation3 + $0x3f0] sm:$0xff] }
 0x19a   :  { %3072 = vmatpush3.bf16.msra.mxu1 %v3071_v42  ;;  %v852_v42 = vld [vmem:[#allocation3 + $0x270] sm:$0xff]  ;;  %v3093_v0 = vpack.c.bf16 %v977_v11, %v976_v13 }
 0x19b   :  { %3074 = vmatprep.subr.bf16.mxu1 %v3073_v21  ;;  %v1070_v21 = vld [vmem:[#allocation3 + $0x480] sm:$0xff]  ;;  %v3063_v54 = vpack.c.bf16 %v853_v45, %v852_v42  ;;  %v1168_v11 = vld [vmem:[#allocation3 + $0x530] sm:$0xff] }
 0x19c   :  { %3044 = vmatpush3.bf16.msra.mxu0 %v3043_v29  ;;  %v960_v29 = vld [vmem:[#allocation3 + $0x370] sm:$0xff]  ;;  %v3097_v27 = vpack.c.bf16 %v1071_v52, %v1070_v21  ;;  %v1186_v45 = vld [vmem:[#allocation3 + $0x5c0] sm:$0xff] }
 0x19d   :  { %3046 = vmatprep.subr.bf16.mxu0 %v3045_v26  ;;  %v1178_v26 = vld [vmem:[#allocation3 + $0x580] sm:$0xff]  ;;  %v3095_v58 = vpack.c.bf16 %v961_v53, %v960_v29  ;;  %v1080_v53 = vld [vmem:[#allocation3 + $0x4d0] sm:$0xff] }
 0x19e   :  { %3076 = vmatpush3.bf16.msra.mxu1 %v3075_v19  ;;  %v1054_v19 = vld [vmem:[#allocation3 + $0x400] sm:$0xff]  ;;  %v3129_v8 = vpack.c.bf16 %v1179_v18, %v1178_v26 }
 0x19f   :  { %3078 = vmatprep.subr.bf16.mxu1 %v3077_v48  ;;  %v1072_v48 = vld [vmem:[#allocation3 + $0x490] sm:$0xff]  ;;  %v3099_v61 = vpack.c.bf16 %v1055_v55, %v1054_v19  ;;  %v1062_v52 = vld [vmem:[#allocation3 + $0x440] sm:$0xff] }
 0x1a0   :  { %3048 = vmatpush3.bf16.msra.mxu0 %v3047_v60  ;;  %v1162_v60 = vld [vmem:[#allocation3 + $0x500] sm:$0xff]  ;;  %v1188_v55 = vld [vmem:[#allocation3 + $0x5d0] sm:$0xff] }
 0x1a1   :  { %v612_v46 = vpop.f32.mrb[0].mxu1  ;;  %3050 = vmatprep.subr.bf16.mxu0 %v3049_v62  ;;  %v1180_v62 = vld [vmem:[#allocation3 + $0x590] sm:$0xff]  ;;  %v3131_v4 = vpack.c.bf16 %v1163_v43, %v1162_v60  ;;  %v1170_v18 = vld [vmem:[#allocation3 + $0x540] sm:$0xff] }
 0x1a2   :  { %v3980_v9 = vadd.f32 %v612_v46, %v3959_v5  ;;  %3080 = vmatpush3.bf16.msra.mxu1 %v3079_v44  ;;  %v614_v57 = vpop.f32.mrb[1].mxu1  ;;  %v3101_v44 = vpack.c.bf16 %v1073_v30, %v1072_v48  ;;  %v3133_v40 = vpack.c.bf16 %v1181_v63, %v1180_v62  ;;  %v1164_v46 = vld [vmem:[#allocation3 + $0x510] sm:$0xff]  ;;  %v1082_v43 = vld [vmem:[#allocation3 + $0x4e0] sm:$0xff] }
 0x1a3   :  { %v3983_v28 = vadd.f32 %v614_v57, %v3959_v5  ;;  %3082 = vmatprep.subr.bf16.mxu1 %v3081_v56  ;;  %v3057_v5 = vpack.c.bf16 %v867_v35, %v866_v25  ;;  %v1087_v56 = vrot.slane %v3968_v23, 4  ;;  %v1182_v57 = vld [vmem:[#allocation3 + $0x5a0] sm:$0xff]  ;;  %v1064_v30 = vld [vmem:[#allocation3 + $0x450] sm:$0xff] }
 0x1a4   :  { %2375 = vst [vmem:[%s4051_s6 + $0x10] sm:$0xff] %v3980_v9  ;;  %3052 = vmatpush3.bf16.msra.mxu0 %v3051_v7  ;;  %v1075_v7 = vld [vmem:[#allocation3 + $0x4a8] sm:$0xff]  ;;  %v1058_v35 = vld [vmem:[#allocation3 + $0x420] sm:$0xff]  ;;  %v1172_v63 = vld [vmem:[#allocation3 + $0x550] sm:$0xff] }
 0x1a5   :  { %2376 = vst [vmem:[%s4051_s6 + $0x18] sm:$0xff] %v3983_v28  ;;  %3054 = vmatprep.subr.bf16.mxu0 %v3053_v50  ;;  %v1165_v50 = vld [vmem:[#allocation3 + $0x518] sm:$0xff]  ;;  %v3105_v25 = vpack.c.bf16 %v1075_v7, %v1074_v6  ;;  %v1067_v6 = vld [vmem:[#allocation3 + $0x468] sm:$0xff] }
 0x1a6   :  { %3084 = vmatpush3.bf16.msra.mxu1 %v3083_v24  ;;  %v1183_v24 = vld [vmem:[#allocation3 + $0x5a8] sm:$0xff]  ;;  %v3135_v17 = vpack.c.bf16 %v1165_v50, %v1164_v46  ;;  %v3153_v46 = vpack.c.bf16 %v1191_v15, %v1190_v10  ;;  %v1174_v50 = vld [vmem:[#allocation3 + $0x560] sm:$0xff] }
 0x1a7   :  { %3086 = vmatprep.subr.bf16.mxu1 %v3085_v16  ;;  %v1059_v16 = vld [vmem:[#allocation3 + $0x428] sm:$0xff]  ;;  %v3137_v2 = vpack.c.bf16 %v1183_v24, %v1182_v57  ;;  %v1192_v57 = vld [vmem:[#allocation3 + $0x5f0] sm:$0xff]  ;;  %v1193_v24 = vld [vmem:[#allocation3 + $0x5f8] sm:$0xff] }
 0x1a8   :  { %3056 = vmatpush3.bf16.msra.mxu0 %v3055_v12  ;;  %v1077_v12 = vld [vmem:[#allocation3 + $0x4b8] sm:$0xff]  ;;  %v3107_v32 = vpack.c.bf16 %v1059_v16, %v1058_v35  ;;  %v1068_v35 = vld [vmem:[#allocation3 + $0x470] sm:$0xff]  ;;  %v1382_v15 = vld [vmem:[#allocation3 + $0x720] sm:$0xff] }
 0x1a9   :  { %3058 = vmatprep.subr.bf16.mxu0 %v3057_v5  ;;  %v1167_v5 = vld [vmem:[#allocation3 + $0x528] sm:$0xff]  ;;  %v3109_v3 = vpack.c.bf16 %v1077_v12, %v1076_v22  ;;  %v1069_v16 = vld [vmem:[#allocation3 + $0x478] sm:$0xff]  ;;  %v1286_v22 = vld [vmem:[#allocation3 + $0x680] sm:$0xff] }
 0x1aa   :  { %3088 = vmatpush3.bf16.msra.mxu1 %v3087_v33  ;;  %v1185_v33 = vld [vmem:[#allocation3 + $0x5b8] sm:$0xff]  ;;  %v3139_v37 = vpack.c.bf16 %v1167_v5, %v1166_v34  ;;  %v1287_v12 = vld [vmem:[#allocation3 + $0x688] sm:$0xff]  ;;  %v1176_v34 = vld [vmem:[#allocation3 + $0x570] sm:$0xff] }
 0x1ab   :  { %3090 = vmatprep.subr.bf16.mxu1 %v3089_v20  ;;  %v1061_v20 = vld [vmem:[#allocation3 + $0x438] sm:$0xff]  ;;  %v3141_v13 = vpack.c.bf16 %v1185_v33, %v1184_v36  ;;  %v1394_v36 = vld [vmem:[#allocation3 + $0x780] sm:$0xff]  ;;  %v1395_v33 = vld [vmem:[#allocation3 + $0x788] sm:$0xff] }
 0x1ac   :  { %3060 = vmatpush3.bf16.msra.mxu0 %v3059_v59  ;;  %v1079_v59 = vld [vmem:[#allocation3 + $0x4c8] sm:$0xff]  ;;  %v3111_v42 = vpack.c.bf16 %v1061_v20, %v1060_v31  ;;  %v1177_v5 = vld [vmem:[#allocation3 + $0x578] sm:$0xff]  ;;  %v1270_v31 = vld [vmem:[#allocation3 + $0x600] sm:$0xff] }
 0x1ad   :  { %3062 = vmatprep.subr.bf16.mxu0 %v3061_v39  ;;  %v1169_v39 = vld [vmem:[#allocation3 + $0x538] sm:$0xff]  ;;  %v3113_v21 = vpack.c.bf16 %v1079_v59, %v1078_v38  ;;  %v1271_v20 = vld [vmem:[#allocation3 + $0x608] sm:$0xff]  ;;  %v1288_v38 = vld [vmem:[#allocation3 + $0x690] sm:$0xff] }
 0x1ae   :  { %3092 = vmatpush3.bf16.msra.mxu1 %v3091_v47  ;;  %v1187_v47 = vld [vmem:[#allocation3 + $0x5c8] sm:$0xff]  ;;  %v3143_v29 = vpack.c.bf16 %v1169_v39, %v1168_v11  ;;  %v1289_v59 = vld [vmem:[#allocation3 + $0x698] sm:$0xff]  ;;  %v1378_v11 = vld [vmem:[#allocation3 + $0x700] sm:$0xff] }
 0x1af   :  { %3094 = vmatprep.subr.bf16.mxu1 %v3093_v0  ;;  %v1063_v0 = vld [vmem:[#allocation3 + $0x448] sm:$0xff]  ;;  %v3145_v26 = vpack.c.bf16 %v1187_v47, %v1186_v45  ;;  %v1396_v45 = vld [vmem:[#allocation3 + $0x790] sm:$0xff]  ;;  %v1397_v47 = vld [vmem:[#allocation3 + $0x798] sm:$0xff] }
 0x1b0   :  { %3064 = vmatpush3.bf16.msra.mxu0 %v3063_v54  ;;  %v1081_v54 = vld [vmem:[#allocation3 + $0x4d8] sm:$0xff]  ;;  %v3115_v19 = vpack.c.bf16 %v1063_v0, %v1062_v52  ;;  %v1379_v39 = vld [vmem:[#allocation3 + $0x708] sm:$0xff]  ;;  %v3165_v52 = vpack.c.bf16 %v1289_v59, %v1288_v38  ;;  %v1272_v0 = vld [vmem:[#allocation3 + $0x610] sm:$0xff] }
 0x1b1   :  { %3098 = vmatprep.subr.bf16.mxu0 %v3097_v27  ;;  %v1171_v27 = vld [vmem:[#allocation3 + $0x548] sm:$0xff]  ;;  %v3117_v48 = vpack.c.bf16 %v1081_v54, %v1080_v53  ;;  %v1303_v53 = vrot.slane %v3968_v23, 6  ;;  %v3195_v54 = vpack.c.bf16 %v1379_v39, %v1378_v11  ;;  %v1280_v38 = vld [vmem:[#allocation3 + $0x650] sm:$0xff]  ;;  %v1281_v59 = vld [vmem:[#allocation3 + $0x658] sm:$0xff] }
 0x1b2   :  { %3096 = vmatpush3.bf16.msra.mxu1 %v3095_v58  ;;  %v1189_v58 = vld [vmem:[#allocation3 + $0x5d8] sm:$0xff]  ;;  %v3147_v60 = vpack.c.bf16 %v1171_v27, %v1170_v18  ;;  %v1291_v18 = vld [vmem:[#allocation3 + $0x6a8] sm:$0xff]  ;;  %v1194_v27 = vrot.slane %v3963_v41, 5  ;;  %v1298_v11 = vld [vmem:[#allocation3 + $0x6e0] sm:$0xff] }
 0x1b3   :  { %939 = vmatmul.mubr.f32.vlgmr.msra.gmra.mrb[4].mxu0 %v870_v49  ;;  %3130 = vmatprep.subr.bf16.mxu1 %v3129_v8  ;;  %v1065_v8 = vld [vmem:[#allocation3 + $0x458] sm:$0xff]  ;;  %v3149_v62 = vpack.c.bf16 %v1189_v58, %v1188_v55  ;;  %v1380_v55 = vld [vmem:[#allocation3 + $0x710] sm:$0xff]  ;;  %v1299_v39 = vld [vmem:[#allocation3 + $0x6e8] sm:$0xff] }
 0x1b4   :  { %3100 = vmatpush3.bf16.msra.mxu0 %v3099_v61  ;;  %1154 = vmatprep.mubr.f32.mxu0 %v1087_v56  ;;  %v1083_v61 = vld [vmem:[#allocation3 + $0x4e8] sm:$0xff]  ;;  %v1173_v49 = vld [vmem:[#allocation3 + $0x558] sm:$0xff] }
 0x1b5   :  { %1047 = vmatmul.mubr.f32.vlgmr.msra.gmra.mrb[4].mxu1 %v978_v14  ;;  %3102 = vmatprep.subr.bf16.mxu0 %v3101_v44  ;;  %v3119_v44 = vpack.c.bf16 %v1065_v8, %v1064_v30  ;;  %v3121_v56 = vpack.c.bf16 %v1083_v61, %v1082_v43  ;;  %v3151_v7 = vpack.c.bf16 %v1173_v49, %v1172_v63  ;;  %v1084_v14 = vld [vmem:[#allocation3 + $0x4f0] sm:$0xff]  ;;  %v1381_v58 = vld [vmem:[#allocation3 + $0x718] sm:$0xff]  ;;  %v1398_v8 = vld [vmem:[#allocation3 + $0x7a0] sm:$0xff] }
 0x1b6   :  { %3132 = vmatpush3.bf16.msra.mxu1 %v3131_v4  ;;  %1262 = vmatprep.mubr.f32.mxu1 %v1195_v1  ;;  %v1066_v4 = vld [vmem:[#allocation3 + $0x460] sm:$0xff]  ;;  %v1175_v1 = vld [vmem:[#allocation3 + $0x568] sm:$0xff]  ;;  %v3199_v63 = vpack.c.bf16 %v1381_v58, %v1380_v55  ;;  %v1292_v49 = vld [vmem:[#allocation3 + $0x6b0] sm:$0xff] }
 0x1b7   :  { %3134 = vmatprep.subr.bf16.mxu1 %v3133_v40  ;;  %v1085_v40 = vld [vmem:[#allocation3 + $0x4f8] sm:$0xff]  ;;  %v1274_v61 = vld [vmem:[#allocation3 + $0x620] sm:$0xff]  ;;  %v1391_v58 = vld [vmem:[#allocation3 + $0x768] sm:$0xff] }
 0x1b8   :  { %3104 = vmatpush3.bf16.msra.mxu0 %v3103_v51  ;;  %v3123_v51 = vpack.c.bf16 %v1067_v6, %v1066_v4  ;;  %v1401_v6 = vld [vmem:[#allocation3 + $0x7b8] sm:$0xff]  ;;  %v1390_v55 = vld [vmem:[#allocation3 + $0x760] sm:$0xff] }
 0x1b9   :  { %3106 = vmatprep.subr.bf16.mxu0 %v3105_v25  ;;  %v3125_v25 = vpack.c.bf16 %v1085_v40, %v1084_v14  ;;  %v1276_v14 = vld [vmem:[#allocation3 + $0x630] sm:$0xff]  ;;  %v1277_v40 = vld [vmem:[#allocation3 + $0x638] sm:$0xff] }
 0x1ba   :  { %3136 = vmatpush3.bf16.msra.mxu1 %v3135_v17  ;;  %v3155_v17 = vpack.c.bf16 %v1175_v1, %v1174_v50  ;;  %v1294_v50 = vld [vmem:[#allocation3 + $0x6c0] sm:$0xff]  ;;  %v1295_v1 = vld [vmem:[#allocation3 + $0x6c8] sm:$0xff] }
 0x1bb   :  { %3138 = vmatprep.subr.bf16.mxu1 %v3137_v2  ;;  %v3157_v2 = vpack.c.bf16 %v1193_v24, %v1192_v57  ;;  %v1384_v57 = vld [vmem:[#allocation3 + $0x730] sm:$0xff]  ;;  %v1385_v24 = vld [vmem:[#allocation3 + $0x738] sm:$0xff] }
 0x1bc   :  { %3108 = vmatpush3.bf16.msra.mxu0 %v3107_v32  ;;  %v3127_v32 = vpack.c.bf16 %v1069_v16, %v1068_v35  ;;  %v1402_v35 = vld [vmem:[#allocation3 + $0x7c0] sm:$0xff]  ;;  %v1403_v16 = vld [vmem:[#allocation3 + $0x7c8] sm:$0xff] }
 0x1bd   :  { %3110 = vmatprep.subr.bf16.mxu0 %v3109_v3  ;;  %v3161_v3 = vpack.c.bf16 %v1287_v12, %v1286_v22  ;;  %v1278_v22 = vld [vmem:[#allocation3 + $0x640] sm:$0xff]  ;;  %v1279_v12 = vld [vmem:[#allocation3 + $0x648] sm:$0xff] }
 0x1be   :  { %3140 = vmatpush3.bf16.msra.mxu1 %v3139_v37  ;;  %v3159_v37 = vpack.c.bf16 %v1177_v5, %v1176_v34  ;;  %v1296_v34 = vld [vmem:[#allocation3 + $0x6d0] sm:$0xff]  ;;  %v1297_v5 = vld [vmem:[#allocation3 + $0x6d8] sm:$0xff] }
 0x1bf   :  { %3142 = vmatprep.subr.bf16.mxu1 %v3141_v13  ;;  %v3193_v13 = vpack.c.bf16 %v1395_v33, %v1394_v36  ;;  %v1386_v36 = vld [vmem:[#allocation3 + $0x740] sm:$0xff]  ;;  %v1387_v33 = vld [vmem:[#allocation3 + $0x748] sm:$0xff] }
 0x1c0   :  { %3112 = vmatpush3.bf16.msra.mxu0 %v3111_v42  ;;  %v3163_v42 = vpack.c.bf16 %v1271_v20, %v1270_v31  ;;  %v1404_v31 = vld [vmem:[#allocation3 + $0x7d0] sm:$0xff]  ;;  %v1405_v20 = vld [vmem:[#allocation3 + $0x7d8] sm:$0xff] }
 0x1c1   :  { %3114 = vmatprep.subr.bf16.mxu0 %v3113_v21  ;;  %v1086_v21 = vrot.slane %v3963_v41, 4 }
 0x1c2   :  { %3144 = vmatpush3.bf16.msra.mxu1 %v3143_v29  ;;  %v1273_v29 = vld [vmem:[#allocation3 + $0x618] sm:$0xff] }
 0x1c3   :  { %3146 = vmatprep.subr.bf16.mxu1 %v3145_v26  ;;  %v1290_v26 = vld [vmem:[#allocation3 + $0x6a0] sm:$0xff]  ;;  %v3167_v30 = vpack.c.bf16 %v1273_v29, %v1272_v0  ;;  %v1407_v0 = vld [vmem:[#allocation3 + $0x7e8] sm:$0xff]  ;;  %v3185_v29 = vpack.c.bf16 %v1299_v39, %v1298_v11  ;;  %v1513_v39 = vld [vmem:[#allocation3 + $0xb0] sm:$0xff] }
 0x1c4   :  { %3116 = vmatpush3.bf16.msra.mxu0 %v3115_v19  ;;  %v3197_v19 = vpack.c.bf16 %v1397_v47, %v1396_v45  ;;  %v3169_v43 = vpack.c.bf16 %v1291_v18, %v1290_v26  ;;  %v1388_v45 = vld [vmem:[#allocation3 + $0x750] sm:$0xff]  ;;  %v1389_v47 = vld [vmem:[#allocation3 + $0x758] sm:$0xff]  ;;  %v1496_v11 = vld [vmem:[#allocation3 + $0x28] sm:$0xff] }
 0x1c5   :  { %3118 = vmatprep.subr.bf16.mxu0 %v3117_v48  ;;  %v1411_v48 = vrot.slane %v3968_v23, 7  ;;  %v1400_v23 = vld [vmem:[#allocation3 + $0x7b0] sm:$0xff]  ;;  %v3215_v26 = vpack.c.bf16 %v1389_v47, %v1388_v45  ;;  %v1598_v47 = vld [vmem:[#allocation3 + $0x120] sm:$0xff] }
 0x1c6   :  { %3148 = vmatpush3.bf16.msra.mxu1 %v3147_v60  ;;  %v1399_v60 = vld [vmem:[#allocation3 + $0x7a8] sm:$0xff]  ;;  %v1300_v18 = vld [vmem:[#allocation3 + $0x6f0] sm:$0xff] }
 0x1c7   :  { %3150 = vmatprep.subr.bf16.mxu1 %v3149_v62  ;;  %v1275_v62 = vld [vmem:[#allocation3 + $0x628] sm:$0xff]  ;;  %v3201_v10 = vpack.c.bf16 %v1399_v60, %v1398_v8  ;;  %v1409_v8 = vld [vmem:[#allocation3 + $0x7f8] sm:$0xff] }
 0x1c8   :  { %3120 = vmatpush3.bf16.msra.mxu0 %v3119_v44  ;;  %v1293_v44 = vld [vmem:[#allocation3 + $0x6b8] sm:$0xff]  ;;  %v3171_v4 = vpack.c.bf16 %v1275_v62, %v1274_v61  ;;  %v3219_v62 = vpack.c.bf16 %v1391_v58, %v1390_v55  ;;  %v1600_v58 = vld [vmem:[#allocation3 + $0x130] sm:$0xff] }
 0x1c9   :  { %3122 = vmatprep.subr.bf16.mxu0 %v3121_v56  ;;  %v1383_v56 = vld [vmem:[#allocation3 + $0x728] sm:$0xff]  ;;  %v1285_v61 = vld [vmem:[#allocation3 + $0x678] sm:$0xff] }
 0x1ca   :  { %3152 = vmatpush3.bf16.msra.mxu1 %v3151_v7  ;;  %v3173_v7 = vpack.c.bf16 %v1293_v44, %v1292_v49  ;;  %v1508_v49 = vld [vmem:[#allocation3 + $0x88] sm:$0xff] }
 0x1cb   :  { %3154 = vmatprep.subr.bf16.mxu1 %v3153_v46  ;;  %v3203_v46 = vpack.c.bf16 %v1383_v56, %v1382_v15  ;;  %v1393_v15 = vld [vmem:[#allocation3 + $0x778] sm:$0xff] }
 0x1cc   :  { %3124 = vmatpush3.bf16.msra.mxu0 %v3123_v51  ;;  %v3205_v51 = vpack.c.bf16 %v1401_v6, %v1400_v23  ;;  %v1611_v23 = vld [vmem:[#allocation3 + $0x188] sm:$0xff] }
 0x1cd   :  { %3126 = vmatprep.subr.bf16.mxu0 %v3125_v25  ;;  %v3175_v25 = vpack.c.bf16 %v1277_v40, %v1276_v14  ;;  %v1492_v14 = vld [vmem:[#allocation3 + $0x8] sm:$0xff] }
 0x1ce   :  { %3156 = vmatpush3.bf16.msra.mxu1 %v3155_v17  ;;  %v3177_v17 = vpack.c.bf16 %v1295_v1, %v1294_v50  ;;  %v1510_v50 = vld [vmem:[#allocation3 + $0x98] sm:$0xff] }
 0x1cf   :  { %3158 = vmatprep.subr.bf16.mxu1 %v3157_v2  ;;  %v3207_v2 = vpack.c.bf16 %v1385_v24, %v1384_v57  ;;  %v1595_v57 = vld [vmem:[#allocation3 + $0x108] sm:$0xff]  ;;  %v4002_v24 = vmax.f32 %v3983_v28, 0.0 }
 0x1d0   :  { %3128 = vmatpush3.bf16.msra.mxu0 %v3127_v32  ;;  %v3209_v32 = vpack.c.bf16 %v1403_v16, %v1402_v35  ;;  %v1612_v35 = vld [vmem:[#allocation3 + $0x190] sm:$0xff]  ;;  %v1613_v16 = vld [vmem:[#allocation3 + $0x198] sm:$0xff] }
 0x1d1   :  { %3162 = vmatprep.subr.bf16.mxu0 %v3161_v3  ;;  %v3179_v3 = vpack.c.bf16 %v1279_v12, %v1278_v22  ;;  %v1493_v12 = vld [vmem:[#allocation3 + $0x10] sm:$0xff]  ;;  %v3261_v28 = vpack.c.bf16 %v1613_v16, %v1612_v35  ;;  %v1622_v16 = vld [vmem:[#allocation3 + $0x1e0] sm:$0xff] }
 0x1d2   :  { %3160 = vmatpush3.bf16.msra.mxu1 %v3159_v37  ;;  %v3181_v37 = vpack.c.bf16 %v1297_v5, %v1296_v34  ;;  %v1511_v5 = vld [vmem:[#allocation3 + $0xa0] sm:$0xff] }
 0x1d3   :  { %1155 = vmatmul.mubr.f32.vlgmr.msra.gmra.mrb[6].mxu0 %v1086_v21  ;;  %3194 = vmatprep.subr.bf16.mxu1 %v3193_v13  ;;  %v3211_v13 = vpack.c.bf16 %v1387_v33, %v1386_v36  ;;  %v3183_v21 = vpack.c.bf16 %v1281_v59, %v1280_v38  ;;  %v1410_v36 = vrot.slane %v3963_v41, 7  ;;  %v1596_v33 = vld [vmem:[#allocation3 + $0x110] sm:$0xff]  ;;  %v1615_v38 = vld [vmem:[#allocation3 + $0x1a8] sm:$0xff] }
 0x1d4   :  { %3164 = vmatpush3.bf16.msra.mxu0 %v3163_v42  ;;  %1370 = vmatprep.mubr.f32.mxu0 %v1303_v53  ;;  %v3213_v42 = vpack.c.bf16 %v1405_v20, %v1404_v31  ;;  %v1282_v53 = vld [vmem:[#allocation3 + $0x660] sm:$0xff]  ;;  %v1629_v31 = vrot.slane %v4002_v24, 1 }
 0x1d5   :  { %1263 = vmatmul.mubr.f32.vlgmr.msra.gmra.mrb[6].mxu1 %v1194_v27  ;;  %3166 = vmatprep.subr.bf16.mxu0 %v3165_v52  ;;  %v1406_v52 = vld [vmem:[#allocation3 + $0x7e0] sm:$0xff]  ;;  %v1301_v27 = vld [vmem:[#allocation3 + $0x6f8] sm:$0xff] }
 0x1d6   :  { %3196 = vmatpush3.bf16.msra.mxu1 %v3195_v54  ;;  %1478 = vmatprep.mubr.f32.mxu1 %v1411_v48  ;;  %v1283_v54 = vld [vmem:[#allocation3 + $0x668] sm:$0xff]  ;;  %v3189_v60 = vpack.c.bf16 %v1301_v27, %v1300_v18  ;;  %v1515_v27 = vld [vmem:[#allocation3 + $0xc0] sm:$0xff] }
 0x1d7   :  { %3198 = vmatprep.subr.bf16.mxu1 %v3197_v19  ;;  %v3217_v19 = vpack.c.bf16 %v1407_v0, %v1406_v52  ;;  %v3187_v48 = vpack.c.bf16 %v1283_v54, %v1282_v53  ;;  %v1616_v0 = vld [vmem:[#allocation3 + $0x1b0] sm:$0xff] }
 0x1d8   :  { %3168 = vmatpush3.bf16.msra.mxu0 %v3167_v30  ;;  %v1408_v30 = vld [vmem:[#allocation3 + $0x7f0] sm:$0xff] }
 0x1d9   :  { %3170 = vmatprep.subr.bf16.mxu0 %v3169_v43  ;;  %v1284_v43 = vld [vmem:[#allocation3 + $0x670] sm:$0xff]  ;;  %v3221_v44 = vpack.c.bf16 %v1409_v8, %v1408_v30  ;;  %v1618_v8 = vld [vmem:[#allocation3 + $0x1c0] sm:$0xff] }
 0x1da   :  { %3200 = vmatpush3.bf16.msra.mxu1 %v3199_v63  ;;  %v1507_v63 = vld [vmem:[#allocation3 + $0x80] sm:$0xff]  ;;  %v3191_v56 = vpack.c.bf16 %v1285_v61, %v1284_v43  ;;  %v1497_v54 = vld [vmem:[#allocation3 + $0x30] sm:$0xff] }
 0x1db   :  { %3202 = vmatprep.subr.bf16.mxu1 %v3201_v10  ;;  %v1392_v10 = vld [vmem:[#allocation3 + $0x770] sm:$0xff]  ;;  %v3225_v6 = vpack.c.bf16 %v1508_v49, %v1507_v63  ;;  %v1499_v61 = vld [vmem:[#allocation3 + $0x40] sm:$0xff] }
 0x1dc   :  { %3172 = vmatpush3.bf16.msra.mxu0 %v3171_v4  ;;  %v1610_v4 = vld [vmem:[#allocation3 + $0x180] sm:$0xff]  ;;  %v3223_v40 = vpack.c.bf16 %v1393_v15, %v1392_v10  ;;  %v1517_v49 = vld [vmem:[#allocation3 + $0xd0] sm:$0xff] }
 0x1dd   :  { %3174 = vmatprep.subr.bf16.mxu0 %v3173_v7  ;;  %v1491_v7 = vld [vmem:[#allocation3] sm:$0xff]  ;;  %v3257_v1 = vpack.c.bf16 %v1611_v23, %v1610_v4  ;;  %v1620_v23 = vld [vmem:[#allocation3 + $0x1d0] sm:$0xff] }
 0x1de   :  { %3204 = vmatpush3.bf16.msra.mxu1 %v3203_v46  ;;  %v1509_v46 = vld [vmem:[#allocation3 + $0x90] sm:$0xff]  ;;  %v1602_v15 = vld [vmem:[#allocation3 + $0x140] sm:$0xff] }
 0x1df   :  { %3206 = vmatprep.subr.bf16.mxu1 %v3205_v51  ;;  %v1594_v51 = vld [vmem:[#allocation3 + $0x100] sm:$0xff]  ;;  %v3229_v22 = vpack.c.bf16 %v1510_v50, %v1509_v46 }
 0x1e0   :  { %3176 = vmatpush3.bf16.msra.mxu0 %v3175_v25  ;;  %v3227_v25 = vpack.c.bf16 %v1492_v14, %v1491_v7  ;;  %v3259_v34 = vpack.c.bf16 %v1595_v57, %v1594_v51  ;;  %v1501_v14 = vld [vmem:[#allocation3 + $0x50] sm:$0xff]  ;;  %v1519_v50 = vld [vmem:[#allocation3 + $0xe0] sm:$0xff] }
 0x1e1   :  { %3178 = vmatprep.subr.bf16.mxu0 %v3177_v17  ;;  %v1302_v17 = vrot.slane %v3963_v41, 6  ;;  %v1604_v57 = vld [vmem:[#allocation3 + $0x150] sm:$0xff] }
 0x1e2   :  { %3208 = vmatpush3.bf16.msra.mxu1 %v3207_v2  ;;  %v1494_v2 = vld [vmem:[#allocation3 + $0x18] sm:$0xff] }
 0x1e3   :  { %3210 = vmatprep.subr.bf16.mxu1 %v3209_v32  ;;  %v1512_v32 = vld [vmem:[#allocation3 + $0xa8] sm:$0xff]  ;;  %v3231_v20 = vpack.c.bf16 %v1494_v2, %v1493_v12  ;;  %v1503_v12 = vld [vmem:[#allocation3 + $0x60] sm:$0xff] }
 0x1e4   :  { %3180 = vmatpush3.bf16.msra.mxu0 %v3179_v3  ;;  %v1597_v3 = vld [vmem:[#allocation3 + $0x118] sm:$0xff]  ;;  %v3233_v59 = vpack.c.bf16 %v1512_v32, %v1511_v5  ;;  %v1504_v2 = vld [vmem:[#allocation3 + $0x68] sm:$0xff]  ;;  %v1521_v5 = vld [vmem:[#allocation3 + $0xf0] sm:$0xff] }
 0x1e5   :  { %3182 = vmatprep.subr.bf16.mxu0 %v3181_v37  ;;  %v1614_v37 = vld [vmem:[#allocation3 + $0x1a0] sm:$0xff]  ;;  %v3263_v41 = vpack.c.bf16 %v1597_v3, %v1596_v33  ;;  %v1522_v32 = vld [vmem:[#allocation3 + $0xf8] sm:$0xff]  ;;  %v1607_v33 = vld [vmem:[#allocation3 + $0x168] sm:$0xff]  ;;  %v3251_v3 = vpack.c.bf16 %v1504_v2, %v1503_v12 }
 0x1e6   :  { %3212 = vmatpush3.bf16.msra.mxu1 %v3211_v13  ;;  %v1495_v13 = vld [vmem:[#allocation3 + $0x20] sm:$0xff]  ;;  %v3265_v45 = vpack.c.bf16 %v1615_v38, %v1614_v37  ;;  %v3253_v37 = vpack.c.bf16 %v1522_v32, %v1521_v5  ;;  %v1505_v38 = vld [vmem:[#allocation3 + $0x70] sm:$0xff] }
 0x1e7   :  { %3214 = vmatprep.subr.bf16.mxu1 %v3213_v42  ;;  %v1514_v42 = vld [vmem:[#allocation3 + $0xb8] sm:$0xff]  ;;  %v3235_v52 = vpack.c.bf16 %v1496_v11, %v1495_v13  ;;  %v1719_v11 = vld [vmem:[#allocation3 + $0x280] sm:$0xff]  ;;  %v1709_v2 = vld [vmem:[#allocation3 + $0x230] sm:$0xff] }
 0x1e8   :  { %3184 = vmatpush3.bf16.msra.mxu0 %v3183_v21  ;;  %v1599_v21 = vld [vmem:[#allocation3 + $0x128] sm:$0xff]  ;;  %v3237_v53 = vpack.c.bf16 %v1514_v42, %v1513_v39  ;;  %v1608_v42 = vld [vmem:[#allocation3 + $0x170] sm:$0xff]  ;;  %v1727_v32 = vld [vmem:[#allocation3 + $0x2c0] sm:$0xff] }
 0x1e9   :  { %3186 = vmatprep.subr.bf16.mxu0 %v3185_v29  ;;  %v1617_v29 = vld [vmem:[#allocation3 + $0x1b8] sm:$0xff]  ;;  %v3267_v18 = vpack.c.bf16 %v1599_v21, %v1598_v47  ;;  %v1826_v21 = vld [vmem:[#allocation3 + $0x380] sm:$0xff] }
 0x1ea   :  { %3216 = vmatpush3.bf16.msra.mxu1 %v3215_v26  ;;  %v1498_v26 = vld [vmem:[#allocation3 + $0x38] sm:$0xff]  ;;  %v3269_v55 = vpack.c.bf16 %v1617_v29, %v1616_v0  ;;  %v1703_v29 = vld [vmem:[#allocation3 + $0x200] sm:$0xff] }
 0x1eb   :  { %3218 = vmatprep.subr.bf16.mxu1 %v3217_v19  ;;  %v1516_v19 = vld [vmem:[#allocation3 + $0xc8] sm:$0xff]  ;;  %v3239_v30 = vpack.c.bf16 %v1498_v26, %v1497_v54  ;;  %v1721_v26 = vld [vmem:[#allocation3 + $0x290] sm:$0xff] }
 0x1ec   :  { %3188 = vmatpush3.bf16.msra.mxu0 %v3187_v48  ;;  %v1601_v48 = vld [vmem:[#allocation3 + $0x138] sm:$0xff]  ;;  %v3241_v43 = vpack.c.bf16 %v1516_v19, %v1515_v27  ;;  %v4009_v27 = vmax.f32 %v3980_v9, 0.0 }
 0x1ed   :  { %3190 = vmatprep.subr.bf16.mxu0 %v3189_v60  ;;  %v1619_v60 = vld [vmem:[#allocation3 + $0x1c8] sm:$0xff]  ;;  %v3271_v63 = vpack.c.bf16 %v1601_v48, %v1600_v58 }
 0x1ee   :  { %3220 = vmatpush3.bf16.msra.mxu1 %v3219_v62  ;;  %v1500_v62 = vld [vmem:[#allocation3 + $0x48] sm:$0xff]  ;;  %v3273_v10 = vpack.c.bf16 %v1619_v60, %v1618_v8  ;;  %v1829_v8 = vld [vmem:[#allocation3 + $0x398] sm:$0xff]  ;;  %v1628_v9 = vrot.slane %v4009_v27, 1 }
 0x1ef   :  { %3222 = vmatprep.subr.bf16.mxu1 %v3221_v44  ;;  %v1518_v44 = vld [vmem:[#allocation3 + $0xd8] sm:$0xff]  ;;  %v3243_v4 = vpack.c.bf16 %v1500_v62, %v1499_v61  ;;  %v1811_v58 = vld [vmem:[#allocation3 + $0x308] sm:$0xff]  ;;  %v1736_v62 = vrot.slane %v4002_v24, 2 }
 0x1f0   :  { %3192 = vmatpush3.bf16.msra.mxu0 %v3191_v56  ;;  %v1603_v56 = vld [vmem:[#allocation3 + $0x148] sm:$0xff]  ;;  %v3245_v7 = vpack.c.bf16 %v1518_v44, %v1517_v49  ;;  %v1706_v61 = vld [vmem:[#allocation3 + $0x218] sm:$0xff]  ;;  %v1723_v49 = vld [vmem:[#allocation3 + $0x2a0] sm:$0xff] }
 0x1f1   :  { %3226 = vmatprep.subr.bf16.mxu0 %v3225_v6  ;;  %v1621_v6 = vld [vmem:[#allocation3 + $0x1d8] sm:$0xff]  ;;  %v3275_v46 = vpack.c.bf16 %v1603_v56, %v1602_v15  ;;  %v1724_v44 = vld [vmem:[#allocation3 + $0x2a8] sm:$0xff]  ;;  %v1812_v15 = vld [vmem:[#allocation3 + $0x310] sm:$0xff] }
 0x1f2   :  { %3224 = vmatpush3.bf16.msra.mxu1 %v3223_v40  ;;  %v1502_v40 = vld [vmem:[#allocation3 + $0x58] sm:$0xff]  ;;  %v3277_v51 = vpack.c.bf16 %v1621_v6, %v1620_v23  ;;  %v1830_v6 = vld [vmem:[#allocation3 + $0x3a0] sm:$0xff] }
 0x1f3   :  { %1371 = vmatmul.mubr.f32.vlgmr.msra.gmra.mrb[8].mxu0 %v1302_v17  ;;  %3258 = vmatprep.subr.bf16.mxu1 %v3257_v1  ;;  %v1520_v1 = vld [vmem:[#allocation3 + $0xe8] sm:$0xff]  ;;  %v3247_v35 = vpack.c.bf16 %v1502_v40, %v1501_v14  ;;  %v1813_v56 = vld [vmem:[#allocation3 + $0x318] sm:$0xff]  ;;  %v3297_v14 = vpack.c.bf16 %v1724_v44, %v1723_v49  ;;  %v1707_v40 = vld [vmem:[#allocation3 + $0x220] sm:$0xff] }
 0x1f4   :  { %3228 = vmatpush3.bf16.msra.mxu0 %v3227_v25  ;;  %1587 = vmatprep.mubr.f32.mxu0 %v4002_v24  ;;  %v1605_v25 = vld [vmem:[#allocation3 + $0x158] sm:$0xff]  ;;  %v1623_v17 = vld [vmem:[#allocation3 + $0x1e8] sm:$0xff]  ;;  %v1733_v49 = vld [vmem:[#allocation3 + $0x2f0] sm:$0xff] }
 0x1f5   :  { %1479 = vmatmul.mubr.f32.vlgmr.msra.gmra.mrb[8].mxu1 %v1410_v36  ;;  %3230 = vmatprep.subr.bf16.mxu0 %v3229_v22  ;;  %v3249_v22 = vpack.c.bf16 %v1520_v1, %v1519_v50  ;;  %v3281_v36 = vpack.c.bf16 %v1623_v17, %v1622_v16  ;;  %v3327_v50 = vpack.c.bf16 %v1813_v56, %v1812_v15  ;;  %v1725_v1 = vld [vmem:[#allocation3 + $0x2b0] sm:$0xff]  ;;  %v1734_v44 = vld [vmem:[#allocation3 + $0x2f8] sm:$0xff]  ;;  %v1823_v15 = vld [vmem:[#allocation3 + $0x368] sm:$0xff] }
 0x1f6   :  { %3260 = vmatpush3.bf16.msra.mxu1 %v3259_v34  ;;  %1696 = vmatprep.mubr.f32.mxu1 %v1629_v31  ;;  %v3279_v34 = vpack.c.bf16 %v1605_v25, %v1604_v57  ;;  %v1624_v31 = vld [vmem:[#allocation3 + $0x1f0] sm:$0xff]  ;;  %v1814_v25 = vld [vmem:[#allocation3 + $0x320] sm:$0xff] }
 0x1f7   :  { %3262 = vmatprep.subr.bf16.mxu1 %v3261_v28  ;;  %v1606_v28 = vld [vmem:[#allocation3 + $0x160] sm:$0xff]  ;;  %v1832_v17 = vld [vmem:[#allocation3 + $0x3b0] sm:$0xff] }
 0x1f8   :  { %3232 = vmatpush3.bf16.msra.mxu0 %v3231_v20  ;;  %v1625_v20 = vld [vmem:[#allocation3 + $0x1f8] sm:$0xff]  ;;  %v3283_v13 = vpack.c.bf16 %v1607_v33, %v1606_v28  ;;  %v1816_v33 = vld [vmem:[#allocation3 + $0x330] sm:$0xff] }
 0x1f9   :  { %3234 = vmatprep.subr.bf16.mxu0 %v3233_v59  ;;  %v1506_v59 = vld [vmem:[#allocation3 + $0x78] sm:$0xff]  ;;  %v3285_v39 = vpack.c.bf16 %v1625_v20, %v1624_v31  ;;  %v1834_v20 = vld [vmem:[#allocation3 + $0x3c0] sm:$0xff] }
 0x1fa   :  { %3264 = vmatpush3.bf16.msra.mxu1 %v3263_v41  ;;  %v1720_v41 = vld [vmem:[#allocation3 + $0x288] sm:$0xff]  ;;  %v3255_v47 = vpack.c.bf16 %v1506_v59, %v1505_v38  ;;  %v1711_v59 = vld [vmem:[#allocation3 + $0x240] sm:$0xff] }
 0x1fb   :  { %3266 = vmatprep.subr.bf16.mxu1 %v3265_v45  ;;  %v1609_v45 = vld [vmem:[#allocation3 + $0x178] sm:$0xff]  ;;  %v3289_v0 = vpack.c.bf16 %v1720_v41, %v1719_v11  ;;  %v1729_v41 = vld [vmem:[#allocation3 + $0x2d0] sm:$0xff] }
 0x1fc   :  { %3236 = vmatpush3.bf16.msra.mxu0 %v3235_v52  ;;  %v1827_v52 = vld [vmem:[#allocation3 + $0x388] sm:$0xff]  ;;  %v3287_v54 = vpack.c.bf16 %v1609_v45, %v1608_v42  ;;  %v1818_v45 = vld [vmem:[#allocation3 + $0x340] sm:$0xff] }
 0x1fd   :  { %3238 = vmatprep.subr.bf16.mxu0 %v3237_v53  ;;  %v1704_v53 = vld [vmem:[#allocation3 + $0x208] sm:$0xff]  ;;  %v3321_v19 = vpack.c.bf16 %v1827_v52, %v1826_v21  ;;  %v1836_v52 = vld [vmem:[#allocation3 + $0x3d0] sm:$0xff] }
 0x1fe   :  { %3268 = vmatpush3.bf16.msra.mxu1 %v3267_v18  ;;  %v1722_v18 = vld [vmem:[#allocation3 + $0x298] sm:$0xff]  ;;  %v3291_v48 = vpack.c.bf16 %v1704_v53, %v1703_v29  ;;  %v1713_v53 = vld [vmem:[#allocation3 + $0x250] sm:$0xff] }
 0x1ff   :  { %3270 = vmatprep.subr.bf16.mxu1 %v3269_v55  ;;  %v1810_v55 = vld [vmem:[#allocation3 + $0x300] sm:$0xff]  ;;  %v3293_v60 = vpack.c.bf16 %v1722_v18, %v1721_v26 }
 0x200   :  { %3240 = vmatpush3.bf16.msra.mxu0 %v3239_v30  ;;  %v1828_v30 = vld [vmem:[#allocation3 + $0x390] sm:$0xff]  ;;  %v1731_v18 = vld [vmem:[#allocation3 + $0x2e0] sm:$0xff] }
 0x201   :  { %3242 = vmatprep.subr.bf16.mxu0 %v3241_v43  ;;  %v1705_v43 = vld [vmem:[#allocation3 + $0x210] sm:$0xff] }
 0x202   :  { %3272 = vmatpush3.bf16.msra.mxu1 %v3271_v63  ;;  %v3323_v63 = vpack.c.bf16 %v1811_v58, %v1810_v55  ;;  %v3295_v23 = vpack.c.bf16 %v1706_v61, %v1705_v43  ;;  %v1820_v58 = vld [vmem:[#allocation3 + $0x350] sm:$0xff]  ;;  %v1715_v61 = vld [vmem:[#allocation3 + $0x260] sm:$0xff] }
 0x203   :  { %3274 = vmatprep.subr.bf16.mxu1 %v3273_v10  ;;  %v3325_v10 = vpack.c.bf16 %v1829_v8, %v1828_v30  ;;  %v1838_v8 = vld [vmem:[#allocation3 + $0x3e0] sm:$0xff] }
 0x204   :  { %3244 = vmatpush3.bf16.msra.mxu0 %v3243_v4  ;;  %v1843_v4 = vrot.slane %v4002_v24, 3 }
 0x205   :  { %3246 = vmatprep.subr.bf16.mxu0 %v3245_v7  ;;  %v1831_v7 = vld [vmem:[#allocation3 + $0x3a8] sm:$0xff] }
 0x206   :  { %3276 = vmatpush3.bf16.msra.mxu1 %v3275_v46  ;;  %v1708_v46 = vld [vmem:[#allocation3 + $0x228] sm:$0xff]  ;;  %v3329_v57 = vpack.c.bf16 %v1831_v7, %v1830_v6  ;;  %v3317_v6 = vpack.c.bf16 %v1734_v44, %v1733_v49  ;;  %v1717_v7 = vld [vmem:[#allocation3 + $0x270] sm:$0xff]  ;;  %v1924_v49 = vld [vmem:[#allocation3 + $0x438] sm:$0xff] }
 0x207   :  { %3278 = vmatprep.subr.bf16.mxu1 %v3277_v51  ;;  %v1726_v51 = vld [vmem:[#allocation3 + $0x2b8] sm:$0xff]  ;;  %v3299_v16 = vpack.c.bf16 %v1708_v46, %v1707_v40  ;;  %v1933_v46 = vld [vmem:[#allocation3 + $0x480] sm:$0xff] }
 0x208   :  { %3248 = vmatpush3.bf16.msra.mxu0 %v3247_v35  ;;  %v1815_v35 = vld [vmem:[#allocation3 + $0x328] sm:$0xff]  ;;  %v3301_v12 = vpack.c.bf16 %v1726_v51, %v1725_v1  ;;  %v1824_v51 = vld [vmem:[#allocation3 + $0x370] sm:$0xff] }
 0x209   :  { %3250 = vmatprep.subr.bf16.mxu0 %v3249_v22  ;;  %v1833_v22 = vld [vmem:[#allocation3 + $0x3b8] sm:$0xff]  ;;  %v3331_v5 = vpack.c.bf16 %v1815_v35, %v1814_v25  ;;  %v2040_v35 = vld [vmem:[#allocation3 + $0x580] sm:$0xff] }
 0x20a   :  { %3280 = vmatpush3.bf16.msra.mxu1 %v3279_v34  ;;  %v1710_v34 = vld [vmem:[#allocation3 + $0x238] sm:$0xff]  ;;  %v3333_v28 = vpack.c.bf16 %v1833_v22, %v1832_v17  ;;  %v1917_v22 = vld [vmem:[#allocation3 + $0x400] sm:$0xff] }
 0x20b   :  { %3282 = vmatprep.subr.bf16.mxu1 %v3281_v36  ;;  %v1728_v36 = vld [vmem:[#allocation3 + $0x2c8] sm:$0xff]  ;;  %v3303_v31 = vpack.c.bf16 %v1710_v34, %v1709_v2  ;;  %v1935_v34 = vld [vmem:[#allocation3 + $0x490] sm:$0xff] }
 0x20c   :  { %3252 = vmatpush3.bf16.msra.mxu0 %v3251_v3  ;;  %v1817_v3 = vld [vmem:[#allocation3 + $0x338] sm:$0xff]  ;;  %v3305_v38 = vpack.c.bf16 %v1728_v36, %v1727_v32  ;;  %v2024_v36 = vld [vmem:[#allocation3 + $0x500] sm:$0xff] }
 0x20d   :  { %3254 = vmatprep.subr.bf16.mxu0 %v3253_v37  ;;  %v1835_v37 = vld [vmem:[#allocation3 + $0x3c8] sm:$0xff]  ;;  %v3335_v11 = vpack.c.bf16 %v1817_v3, %v1816_v33  ;;  %v2042_v3 = vld [vmem:[#allocation3 + $0x590] sm:$0xff] }
 0x20e   :  { %3284 = vmatpush3.bf16.msra.mxu1 %v3283_v13  ;;  %v1712_v13 = vld [vmem:[#allocation3 + $0x248] sm:$0xff]  ;;  %v3337_v42 = vpack.c.bf16 %v1835_v37, %v1834_v20  ;;  %v1735_v20 = vrot.slane %v4009_v27, 2 }
 0x20f   :  { %3286 = vmatprep.subr.bf16.mxu1 %v3285_v39  ;;  %v1730_v39 = vld [vmem:[#allocation3 + $0x2d8] sm:$0xff]  ;;  %v3307_v21 = vpack.c.bf16 %v1712_v13, %v1711_v59  ;;  %v1950_v13 = vrot.slane %v4002_v24, 4 }
 0x210   :  { %3256 = vmatpush3.bf16.msra.mxu0 %v3255_v47  ;;  %v1819_v47 = vld [vmem:[#allocation3 + $0x348] sm:$0xff]  ;;  %v3309_v29 = vpack.c.bf16 %v1730_v39, %v1729_v41  ;;  %v1920_v59 = vld [vmem:[#allocation3 + $0x418] sm:$0xff]  ;;  %v1937_v41 = vld [vmem:[#allocation3 + $0x4a0] sm:$0xff] }
 0x211   :  { %3290 = vmatprep.subr.bf16.mxu0 %v3289_v0  ;;  %v1837_v0 = vld [vmem:[#allocation3 + $0x3d8] sm:$0xff]  ;;  %v3339_v26 = vpack.c.bf16 %v1819_v47, %v1818_v45  ;;  %v1938_v39 = vld [vmem:[#allocation3 + $0x4a8] sm:$0xff]  ;;  %v2026_v47 = vld [vmem:[#allocation3 + $0x510] sm:$0xff] }
 0x212   :  { %3288 = vmatpush3.bf16.msra.mxu1 %v3287_v54  ;;  %v1714_v54 = vld [vmem:[#allocation3 + $0x258] sm:$0xff]  ;;  %v3341_v55 = vpack.c.bf16 %v1837_v0, %v1836_v52  ;;  %v2057_v52 = vrot.slane %v4002_v24, 5 }
 0x213   :  { %1588 = vmatmul.mubr.f32.vlgmr.msra.gmra.mrb[10].mxu0 %v4009_v27  ;;  %3322 = vmatprep.subr.bf16.mxu1 %v3321_v19  ;;  %v1732_v19 = vld [vmem:[#allocation3 + $0x2e8] sm:$0xff]  ;;  %v3311_v30 = vpack.c.bf16 %v1714_v54, %v1713_v53  ;;  %v3361_v54 = vpack.c.bf16 %v1938_v39, %v1937_v41  ;;  %v1947_v41 = vld [vmem:[#allocation3 + $0x4f0] sm:$0xff]  ;;  %v1948_v39 = vld [vmem:[#allocation3 + $0x4f8] sm:$0xff] }
 0x214   :  { %3292 = vmatpush3.bf16.msra.mxu0 %v3291_v48  ;;  %1803 = vmatprep.mubr.f32.mxu0 %v1736_v62  ;;  %v1821_v48 = vld [vmem:[#allocation3 + $0x358] sm:$0xff]  ;;  %v3313_v43 = vpack.c.bf16 %v1732_v19, %v1731_v18  ;;  %v1716_v62 = vld [vmem:[#allocation3 + $0x268] sm:$0xff] }
 0x215   :  { %1697 = vmatmul.mubr.f32.vlgmr.msra.gmra.mrb[10].mxu1 %v1628_v9  ;;  %3294 = vmatprep.subr.bf16.mxu0 %v3293_v60  ;;  %v1839_v60 = vld [vmem:[#allocation3 + $0x3e8] sm:$0xff]  ;;  %v3315_v56 = vpack.c.bf16 %v1716_v62, %v1715_v61  ;;  %v2047_v61 = vld [vmem:[#allocation3 + $0x5b8] sm:$0xff] }
 0x216   :  { %3324 = vmatpush3.bf16.msra.mxu1 %v3323_v63  ;;  %1910 = vmatprep.mubr.f32.mxu1 %v1843_v4  ;;  %v3343_v63 = vpack.c.bf16 %v1821_v48, %v1820_v58  ;;  %v3345_v9 = vpack.c.bf16 %v1839_v60, %v1838_v8  ;;  %v1840_v4 = vld [vmem:[#allocation3 + $0x3f0] sm:$0xff]  ;;  %v2045_v53 = vld [vmem:[#allocation3 + $0x5a8] sm:$0xff]  ;;  %v1940_v58 = vld [vmem:[#allocation3 + $0x4b8] sm:$0xff] }
 0x217   :  { %3326 = vmatprep.subr.bf16.mxu1 %v3325_v10  ;;  %v1822_v10 = vld [vmem:[#allocation3 + $0x360] sm:$0xff]  ;;  %v1922_v18 = vld [vmem:[#allocation3 + $0x428] sm:$0xff] }
 0x218   :  { %3296 = vmatpush3.bf16.msra.mxu0 %v3295_v23  ;;  %v1841_v23 = vld [vmem:[#allocation3 + $0x3f8] sm:$0xff]  ;;  %v3347_v40 = vpack.c.bf16 %v1823_v15, %v1822_v10  ;;  %v2029_v8 = vld [vmem:[#allocation3 + $0x528] sm:$0xff] }
 0x219   :  { %3298 = vmatprep.subr.bf16.mxu0 %v3297_v14  ;;  %v1718_v14 = vld [vmem:[#allocation3 + $0x278] sm:$0xff]  ;;  %v3349_v1 = vpack.c.bf16 %v1841_v23, %v1840_v4  ;;  %v1942_v10 = vld [vmem:[#allocation3 + $0x4c8] sm:$0xff] }
 0x21a   :  { %3328 = vmatpush3.bf16.msra.mxu1 %v3327_v50  ;;  %v1934_v50 = vld [vmem:[#allocation3 + $0x488] sm:$0xff]  ;;  %v3319_v25 = vpack.c.bf16 %v1718_v14, %v1717_v7  ;;  %v2031_v4 = vld [vmem:[#allocation3 + $0x538] sm:$0xff] }
 0x21b   :  { %3330 = vmatprep.subr.bf16.mxu1 %v3329_v57  ;;  %v1825_v57 = vld [vmem:[#allocation3 + $0x378] sm:$0xff]  ;;  %v3353_v17 = vpack.c.bf16 %v1934_v50, %v1933_v46  ;;  %v2049_v7 = vld [vmem:[#allocation3 + $0x5c8] sm:$0xff] }
 0x21c   :  { %3300 = vmatpush3.bf16.msra.mxu0 %v3299_v16  ;;  %v2041_v16 = vld [vmem:[#allocation3 + $0x588] sm:$0xff]  ;;  %v3351_v2 = vpack.c.bf16 %v1825_v57, %v1824_v51  ;;  %v1944_v51 = vld [vmem:[#allocation3 + $0x4d8] sm:$0xff] }
 0x21d   :  { %3302 = vmatprep.subr.bf16.mxu0 %v3301_v12  ;;  %v1918_v12 = vld [vmem:[#allocation3 + $0x408] sm:$0xff]  ;;  %v3385_v32 = vpack.c.bf16 %v2041_v16, %v2040_v35 }
 0x21e   :  { %3332 = vmatpush3.bf16.msra.mxu1 %v3331_v5  ;;  %v1936_v5 = vld [vmem:[#allocation3 + $0x498] sm:$0xff]  ;;  %v3355_v33 = vpack.c.bf16 %v1918_v12, %v1917_v22  ;;  %v1926_v46 = vld [vmem:[#allocation3 + $0x448] sm:$0xff] }
 0x21f   :  { %3334 = vmatprep.subr.bf16.mxu1 %v3333_v28  ;;  %v2025_v28 = vld [vmem:[#allocation3 + $0x508] sm:$0xff]  ;;  %v3357_v37 = vpack.c.bf16 %v1936_v5, %v1935_v34  ;;  %v2051_v22 = vld [vmem:[#allocation3 + $0x5d8] sm:$0xff] }
 0x220   :  { %3304 = vmatpush3.bf16.msra.mxu0 %v3303_v31  ;;  %v2043_v31 = vld [vmem:[#allocation3 + $0x598] sm:$0xff]  ;;  %v2033_v35 = vld [vmem:[#allocation3 + $0x548] sm:$0xff] }
 0x221   :  { %3306 = vmatprep.subr.bf16.mxu0 %v3305_v38  ;;  %v1919_v38 = vld [vmem:[#allocation3 + $0x410] sm:$0xff]  ;;  %v3389_v45 = vpack.c.bf16 %v2043_v31, %v2042_v3  ;;  %v1928_v34 = vld [vmem:[#allocation3 + $0x458] sm:$0xff] }
 0x222   :  { %3336 = vmatpush3.bf16.msra.mxu1 %v3335_v11  ;;  %v3387_v11 = vpack.c.bf16 %v2025_v28, %v2024_v36  ;;  %v3359_v0 = vpack.c.bf16 %v1920_v59, %v1919_v38  ;;  %v1946_v36 = vld [vmem:[#allocation3 + $0x4e8] sm:$0xff]  ;;  %v2035_v3 = vld [vmem:[#allocation3 + $0x558] sm:$0xff]  ;;  %v1929_v59 = vld [vmem:[#allocation3 + $0x460] sm:$0xff] }
 0x223   :  { %3338 = vmatprep.subr.bf16.mxu1 %v3337_v42  ;;  %v1842_v42 = vrot.slane %v4009_v27, 3 }
 0x224   :  { %3308 = vmatpush3.bf16.msra.mxu0 %v3307_v21  ;;  %v2027_v21 = vld [vmem:[#allocation3 + $0x518] sm:$0xff] }
 0x225   :  { %3310 = vmatprep.subr.bf16.mxu0 %v3309_v29  ;;  %v2044_v29 = vld [vmem:[#allocation3 + $0x5a0] sm:$0xff]  ;;  %v3391_v19 = vpack.c.bf16 %v2027_v21, %v2026_v47  ;;  %v2037_v47 = vld [vmem:[#allocation3 + $0x568] sm:$0xff] }
 0x226   :  { %3340 = vmatpush3.bf16.msra.mxu1 %v3339_v26  ;;  %v1921_v26 = vld [vmem:[#allocation3 + $0x420] sm:$0xff]  ;;  %v3393_v48 = vpack.c.bf16 %v2045_v53, %v2044_v29  ;;  %v3381_v29 = vpack.c.bf16 %v1948_v39, %v1947_v41  ;;  %v1931_v53 = vld [vmem:[#allocation3 + $0x470] sm:$0xff] }
 0x227   :  { %3342 = vmatprep.subr.bf16.mxu1 %v3341_v55  ;;  %v1939_v55 = vld [vmem:[#allocation3 + $0x4b0] sm:$0xff]  ;;  %v3363_v60 = vpack.c.bf16 %v1922_v18, %v1921_v26  ;;  %v2147_v18 = vld [vmem:[#allocation3 + $0x680] sm:$0xff] }
 0x228   :  { %3312 = vmatpush3.bf16.msra.mxu0 %v3311_v30  ;;  %v2028_v30 = vld [vmem:[#allocation3 + $0x520] sm:$0xff]  ;;  %v3365_v62 = vpack.c.bf16 %v1940_v58, %v1939_v55  ;;  %v2038_v58 = vld [vmem:[#allocation3 + $0x570] sm:$0xff] }
 0x229   :  { %3314 = vmatprep.subr.bf16.mxu0 %v3313_v43  ;;  %v2046_v43 = vld [vmem:[#allocation3 + $0x5b0] sm:$0xff]  ;;  %v3395_v44 = vpack.c.bf16 %v2029_v8, %v2028_v30  ;;  %v2254_v8 = vld [vmem:[#allocation3 + $0x780] sm:$0xff] }
 0x22a   :  { %3344 = vmatpush3.bf16.msra.mxu1 %v3343_v63  ;;  %v1923_v63 = vld [vmem:[#allocation3 + $0x430] sm:$0xff]  ;;  %v3397_v15 = vpack.c.bf16 %v2047_v61, %v2046_v43  ;;  %v2131_v61 = vld [vmem:[#allocation3 + $0x600] sm:$0xff] }
 0x22b   :  { %3346 = vmatprep.subr.bf16.mxu1 %v3345_v9  ;;  %v1941_v9 = vld [vmem:[#allocation3 + $0x4c0] sm:$0xff]  ;;  %v3367_v23 = vpack.c.bf16 %v1924_v49, %v1923_v63  ;;  %v2149_v49 = vld [vmem:[#allocation3 + $0x690] sm:$0xff] }
 0x22c   :  { %3316 = vmatpush3.bf16.msra.mxu0 %v3315_v56  ;;  %v2030_v56 = vld [vmem:[#allocation3 + $0x530] sm:$0xff]  ;;  %v3369_v14 = vpack.c.bf16 %v1942_v10, %v1941_v9  ;;  %v2238_v10 = vld [vmem:[#allocation3 + $0x700] sm:$0xff] }
 0x22d   :  { %3318 = vmatprep.subr.bf16.mxu0 %v3317_v6  ;;  %v2048_v6 = vld [vmem:[#allocation3 + $0x5c0] sm:$0xff]  ;;  %v3399_v50 = vpack.c.bf16 %v2031_v4, %v2030_v56  ;;  %v2256_v4 = vld [vmem:[#allocation3 + $0x790] sm:$0xff] }
 0x22e   :  { %3348 = vmatpush3.bf16.msra.mxu1 %v3347_v40  ;;  %v1925_v40 = vld [vmem:[#allocation3 + $0x440] sm:$0xff]  ;;  %v3401_v57 = vpack.c.bf16 %v2049_v7, %v2048_v6  ;;  %v1949_v6 = vrot.slane %v4009_v27, 4 }
 0x22f   :  { %3350 = vmatprep.subr.bf16.mxu1 %v3349_v1  ;;  %v1943_v1 = vld [vmem:[#allocation3 + $0x4d0] sm:$0xff]  ;;  %v3371_v16 = vpack.c.bf16 %v1926_v46, %v1925_v40  ;;  %v2134_v40 = vld [vmem:[#allocation3 + $0x618] sm:$0xff]  ;;  %v2164_v46 = vrot.slane %v4002_v24, 6  ;;  %v2155_v39 = vld [vmem:[#allocation3 + $0x6c0] sm:$0xff] }
 0x230   :  { %3320 = vmatpush3.bf16.msra.mxu0 %v3319_v25  ;;  %v2032_v25 = vld [vmem:[#allocation3 + $0x540] sm:$0xff]  ;;  %v3373_v12 = vpack.c.bf16 %v1944_v51, %v1943_v1  ;;  %v2152_v51 = vld [vmem:[#allocation3 + $0x6a8] sm:$0xff] }
 0x231   :  { %3354 = vmatprep.subr.bf16.mxu0 %v3353_v17  ;;  %v2050_v17 = vld [vmem:[#allocation3 + $0x5d0] sm:$0xff]  ;;  %v3403_v5 = vpack.c.bf16 %v2033_v35, %v2032_v25  ;;  %v2151_v1 = vld [vmem:[#allocation3 + $0x6a0] sm:$0xff] }
 0x232   :  { %3352 = vmatpush3.bf16.msra.mxu1 %v3351_v2  ;;  %v1927_v2 = vld [vmem:[#allocation3 + $0x450] sm:$0xff]  ;;  %v3405_v28 = vpack.c.bf16 %v2051_v22, %v2050_v17  ;;  %v2271_v17 = vrot.slane %v4002_v24, 7 }
 0x233   :  { %1804 = vmatmul.mubr.f32.vlgmr.msra.gmra.mrb[12].mxu0 %v1735_v20  ;;  %3386 = vmatprep.subr.bf16.mxu1 %v3385_v32  ;;  %v1945_v32 = vld [vmem:[#allocation3 + $0x4e0] sm:$0xff]  ;;  %v3375_v31 = vpack.c.bf16 %v1928_v34, %v1927_v2  ;;  %v2240_v35 = vld [vmem:[#allocation3 + $0x710] sm:$0xff]  ;;  %v2259_v2 = vld [vmem:[#allocation3 + $0x7a8] sm:$0xff]  ;;  %v3425_v34 = vpack.c.bf16 %v2152_v51, %v2151_v1 }
 0x234   :  { %3356 = vmatpush3.bf16.msra.mxu0 %v3355_v33  ;;  %2017 = vmatprep.mubr.f32.mxu0 %v1950_v13  ;;  %v2034_v33 = vld [vmem:[#allocation3 + $0x550] sm:$0xff]  ;;  %v2052_v20 = vld [vmem:[#allocation3 + $0x5e0] sm:$0xff]  ;;  %v3377_v38 = vpack.c.bf16 %v1946_v36, %v1945_v32  ;;  %v1930_v13 = vld [vmem:[#allocation3 + $0x468] sm:$0xff] }
 0x235   :  { %1911 = vmatmul.mubr.f32.vlgmr.msra.gmra.mrb[12].mxu1 %v1842_v42  ;;  %3358 = vmatprep.subr.bf16.mxu0 %v3357_v37  ;;  %v2053_v37 = vld [vmem:[#allocation3 + $0x5e8] sm:$0xff]  ;;  %v3379_v21 = vpack.c.bf16 %v1930_v13, %v1929_v59  ;;  %v2260_v24 = vld [vmem:[#allocation3 + $0x7b0] sm:$0xff]  ;;  %v2162_v51 = vld [vmem:[#allocation3 + $0x6f8] sm:$0xff] }
 0x236   :  { %3388 = vmatpush3.bf16.msra.mxu1 %v3387_v11  ;;  %2124 = vmatprep.mubr.f32.mxu1 %v2057_v52  ;;  %v3407_v11 = vpack.c.bf16 %v2035_v3, %v2034_v33  ;;  %v3409_v42 = vpack.c.bf16 %v2053_v37, %v2052_v20  ;;  %v2054_v52 = vld [vmem:[#allocation3 + $0x5f0] sm:$0xff]  ;;  %v2136_v32 = vld [vmem:[#allocation3 + $0x628] sm:$0xff]  ;;  %v2154_v33 = vld [vmem:[#allocation3 + $0x6b8] sm:$0xff] }
 0x237   :  { %3390 = vmatprep.subr.bf16.mxu1 %v3389_v45  ;;  %v2036_v45 = vld [vmem:[#allocation3 + $0x560] sm:$0xff]  ;;  %v2243_v20 = vld [vmem:[#allocation3 + $0x728] sm:$0xff]  ;;  %v2137_v13 = vld [vmem:[#allocation3 + $0x630] sm:$0xff] }
 0x238   :  { %3360 = vmatpush3.bf16.msra.mxu0 %v3359_v0  ;;  %v2055_v0 = vld [vmem:[#allocation3 + $0x5f8] sm:$0xff]  ;;  %v3411_v26 = vpack.c.bf16 %v2037_v47, %v2036_v45  ;;  %v2244_v47 = vld [vmem:[#allocation3 + $0x730] sm:$0xff] }
 0x239   :  { %3362 = vmatprep.subr.bf16.mxu0 %v3361_v54  ;;  %v1932_v54 = vld [vmem:[#allocation3 + $0x478] sm:$0xff]  ;;  %v3413_v55 = vpack.c.bf16 %v2055_v0, %v2054_v52  ;;  %v2262_v0 = vld [vmem:[#allocation3 + $0x7c0] sm:$0xff]  ;;  %v2161_v1 = vld [vmem:[#allocation3 + $0x6f0] sm:$0xff] }
 0x23a   :  { %3392 = vmatpush3.bf16.msra.mxu1 %v3391_v19  ;;  %v2148_v19 = vld [vmem:[#allocation3 + $0x688] sm:$0xff]  ;;  %v3383_v30 = vpack.c.bf16 %v1932_v54, %v1931_v53  ;;  %v2139_v54 = vld [vmem:[#allocation3 + $0x640] sm:$0xff] }
 0x23b   :  { %3394 = vmatprep.subr.bf16.mxu1 %v3393_v48  ;;  %v2039_v48 = vld [vmem:[#allocation3 + $0x578] sm:$0xff]  ;;  %v3417_v43 = vpack.c.bf16 %v2148_v19, %v2147_v18  ;;  %v2157_v19 = vld [vmem:[#allocation3 + $0x6d0] sm:$0xff] }
 0x23c   :  { %3364 = vmatpush3.bf16.msra.mxu0 %v3363_v60  ;;  %v2255_v60 = vld [vmem:[#allocation3 + $0x788] sm:$0xff]  ;;  %v3415_v63 = vpack.c.bf16 %v2039_v48, %v2038_v58  ;;  %v2246_v48 = vld [vmem:[#allocation3 + $0x740] sm:$0xff] }
 0x23d   :  { %3366 = vmatprep.subr.bf16.mxu0 %v3365_v62  ;;  %v2132_v62 = vld [vmem:[#allocation3 + $0x608] sm:$0xff]  ;;  %v3449_v9 = vpack.c.bf16 %v2255_v60, %v2254_v8  ;;  %v2264_v60 = vld [vmem:[#allocation3 + $0x7d0] sm:$0xff] }
 0x23e   :  { %3396 = vmatpush3.bf16.msra.mxu1 %v3395_v44  ;;  %v2150_v44 = vld [vmem:[#allocation3 + $0x698] sm:$0xff]  ;;  %v3419_v56 = vpack.c.bf16 %v2132_v62, %v2131_v61  ;;  %v2141_v62 = vld [vmem:[#allocation3 + $0x650] sm:$0xff] }
 0x23f   :  { %3398 = vmatprep.subr.bf16.mxu1 %v3397_v15  ;;  %v2239_v15 = vld [vmem:[#allocation3 + $0x708] sm:$0xff]  ;;  %v3421_v7 = vpack.c.bf16 %v2150_v44, %v2149_v49  ;;  %v2159_v44 = vld [vmem:[#allocation3 + $0x6e0] sm:$0xff] }
 0x240   :  { %3368 = vmatpush3.bf16.msra.mxu0 %v3367_v23  ;;  %v2257_v23 = vld [vmem:[#allocation3 + $0x798] sm:$0xff] }
 0x241   :  { %3370 = vmatprep.subr.bf16.mxu0 %v3369_v14  ;;  %v2133_v14 = vld [vmem:[#allocation3 + $0x610] sm:$0xff]  ;;  %v3453_v25 = vpack.c.bf16 %v2257_v23, %v2256_v4  ;;  %v2266_v23 = vld [vmem:[#allocation3 + $0x7e0] sm:$0xff] }
 0x242   :  { %3400 = vmatpush3.bf16.msra.mxu1 %v3399_v50  ;;  %v3451_v50 = vpack.c.bf16 %v2239_v15, %v2238_v10  ;;  %v3423_v22 = vpack.c.bf16 %v2134_v40, %v2133_v14  ;;  %v2248_v15 = vld [vmem:[#allocation3 + $0x750] sm:$0xff]  ;;  %v2143_v14 = vld [vmem:[#allocation3 + $0x660] sm:$0xff]  ;;  %v2144_v40 = vld [vmem:[#allocation3 + $0x668] sm:$0xff] }
 0x243   :  { %3402 = vmatprep.subr.bf16.mxu1 %v3401_v57  ;;  %v2056_v57 = vrot.slane %v4009_v27, 5 }
 0x244   :  { %3372 = vmatpush3.bf16.msra.mxu0 %v3371_v16  ;;  %v2241_v16 = vld [vmem:[#allocation3 + $0x718] sm:$0xff] }
 0x245   :  { %3374 = vmatprep.subr.bf16.mxu0 %v3373_v12  ;;  %v2258_v12 = vld [vmem:[#allocation3 + $0x7a0] sm:$0xff]  ;;  %v3455_v36 = vpack.c.bf16 %v2241_v16, %v2240_v35 }
 0x246   :  { %3404 = vmatpush3.bf16.msra.mxu1 %v3403_v5  ;;  %v2135_v5 = vld [vmem:[#allocation3 + $0x620] sm:$0xff]  ;;  %v3457_v3 = vpack.c.bf16 %v2259_v2, %v2258_v12  ;;  %v3443_v2 = vpack.c.bf16 %v2144_v40, %v2143_v14 }
 0x247   :  { %3406 = vmatprep.subr.bf16.mxu1 %v3405_v28  ;;  %v2153_v28 = vld [vmem:[#allocation3 + $0x6b0] sm:$0xff]  ;;  %v3427_v37 = vpack.c.bf16 %v2136_v32, %v2135_v5  ;;  %v2250_v16 = vld [vmem:[#allocation3 + $0x760] sm:$0xff]  ;;  %v2269_v5 = vld [vmem:[#allocation3 + $0x7f8] sm:$0xff] }
 0x248   :  { %3376 = vmatpush3.bf16.msra.mxu0 %v3375_v31  ;;  %v2242_v31 = vld [vmem:[#allocation3 + $0x720] sm:$0xff]  ;;  %v3429_v59 = vpack.c.bf16 %v2154_v33, %v2153_v28  ;;  %v2145_v28 = vld [vmem:[#allocation3 + $0x670] sm:$0xff]  ;;  %v2146_v33 = vld [vmem:[#allocation3 + $0x678] sm:$0xff] }
 0x249   :  { %3378 = vmatprep.subr.bf16.mxu0 %v3377_v38  ;;  %v2261_v38 = vld [vmem:[#allocation3 + $0x7b8] sm:$0xff]  ;;  %v3459_v41 = vpack.c.bf16 %v2243_v20, %v2242_v31 }
 0x24a   :  { %3408 = vmatpush3.bf16.msra.mxu1 %v3407_v11  ;;  %v2138_v11 = vld [vmem:[#allocation3 + $0x638] sm:$0xff]  ;;  %v3461_v45 = vpack.c.bf16 %v2261_v38, %v2260_v24  ;;  %v2252_v24 = vld [vmem:[#allocation3 + $0x770] sm:$0xff] }
 0x24b   :  { %3410 = vmatprep.subr.bf16.mxu1 %v3409_v42  ;;  %v2156_v42 = vld [vmem:[#allocation3 + $0x6c8] sm:$0xff]  ;;  %v3431_v52 = vpack.c.bf16 %v2138_v11, %v2137_v13  ;;  %v2253_v38 = vld [vmem:[#allocation3 + $0x778] sm:$0xff]  ;;  %v3447_v13 = vpack.c.bf16 %v2146_v33, %v2145_v28 }
 0x24c   :  { %3380 = vmatpush3.bf16.msra.mxu0 %v3379_v21  ;;  %v2245_v21 = vld [vmem:[#allocation3 + $0x738] sm:$0xff]  ;;  %v3433_v53 = vpack.c.bf16 %v2156_v42, %v2155_v39  ;;  %v3479_v11 = vpack.c.bf16 %v2253_v38, %v2252_v24  ;;  %v2270_v39 = vrot.slane %v4009_v27, 7 }
 0x24d   :  { %3382 = vmatprep.subr.bf16.mxu0 %v3381_v29  ;;  %v2263_v29 = vld [vmem:[#allocation3 + $0x7c8] sm:$0xff]  ;;  %v3463_v18 = vpack.c.bf16 %v2245_v21, %v2244_v47 }
 0x24e   :  { %3412 = vmatpush3.bf16.msra.mxu1 %v3411_v26  ;;  %v2140_v26 = vld [vmem:[#allocation3 + $0x648] sm:$0xff]  ;;  %v3465_v58 = vpack.c.bf16 %v2263_v29, %v2262_v0 }
 0x24f   :  { %3414 = vmatprep.subr.bf16.mxu1 %v3413_v55  ;;  %v2158_v55 = vld [vmem:[#allocation3 + $0x6d8] sm:$0xff]  ;;  %v3435_v8 = vpack.c.bf16 %v2140_v26, %v2139_v54 }
 0x250   :  { %3384 = vmatpush3.bf16.msra.mxu0 %v3383_v30  ;;  %v2247_v30 = vld [vmem:[#allocation3 + $0x748] sm:$0xff]  ;;  %v3437_v61 = vpack.c.bf16 %v2158_v55, %v2157_v19 }
 0x251   :  { %3418 = vmatprep.subr.bf16.mxu0 %v3417_v43  ;;  %v2265_v43 = vld [vmem:[#allocation3 + $0x7d8] sm:$0xff]  ;;  %v3467_v49 = vpack.c.bf16 %v2247_v30, %v2246_v48 }
 0x252   :  { %3416 = vmatpush3.bf16.msra.mxu1 %v3415_v63  ;;  %v2142_v63 = vld [vmem:[#allocation3 + $0x658] sm:$0xff]  ;;  %v3469_v10 = vpack.c.bf16 %v2265_v43, %v2264_v60 }
 0x253   :  { %2018 = vmatmul.mubr.f32.vlgmr.msra.gmra.mrb[14].mxu0 %v1949_v6  ;;  %3450 = vmatprep.subr.bf16.mxu1 %v3449_v9  ;;  %v2160_v9 = vld [vmem:[#allocation3 + $0x6e8] sm:$0xff]  ;;  %v3439_v4 = vpack.c.bf16 %v2142_v63, %v2141_v62 }
 0x254   :  { %3420 = vmatpush3.bf16.msra.mxu0 %v3419_v56  ;;  %2231 = vmatprep.mubr.f32.mxu0 %v2164_v46  ;;  %v2249_v56 = vld [vmem:[#allocation3 + $0x758] sm:$0xff]  ;;  %v2267_v6 = vld [vmem:[#allocation3 + $0x7e8] sm:$0xff] }
 0x255   :  { %2125 = vmatmul.mubr.f32.vlgmr.msra.gmra.mrb[14].mxu1 %v2056_v57  ;;  %3422 = vmatprep.subr.bf16.mxu0 %v3421_v7  ;;  %v3441_v7 = vpack.c.bf16 %v2160_v9, %v2159_v44  ;;  %v623_v57 = vld [vmem:[%s4050_s5] sm:$0x1]  ;;  %v3473_v35 = vpack.c.bf16 %v2267_v6, %v2266_v23 }
 0x256   :  { %3452 = vmatpush3.bf16.msra.mxu1 %v3451_v50  ;;  %2338 = vmatprep.mubr.f32.mxu1 %v2271_v17  ;;  %v3471_v50 = vpack.c.bf16 %v2249_v56, %v2248_v15  ;;  %v2251_v17 = vld [vmem:[#allocation3 + $0x768] sm:$0xff]  ;;  %v1490_v9 = vld [vmem:[%s4050_s5] sm:$0x1]  ;;  %s3557_s5 = smov [#allocation6]  }
 0x257   :  { %3454 = vmatprep.subr.bf16.mxu1 %v3453_v25  ;;  %v3475_v20 = vpack.c.bf16 %v2251_v17, %v2250_v16  ;;  %s2354_s11 = sshll.u32 %s3557_s5, 4  ;;  %s2355_s11 = int_to_ptr.vmem [resolvable:$true] %s2354_s11 }
 0x258   :  { %3424 = vmatpush3.bf16.msra.mxu0 %v3423_v22  ;;  %s3518_s2 = scalar_lea.vmem %s2355_s11, 32  ;;  %p3523_p9 = scmp.lt.s32.totalorder %s2355_s11, %s2355_s11 }
 0x259   :  { %3426 = vmatprep.subr.bf16.mxu0 %v3425_v34  ;;  %v2268_v34 = vld [vmem:[#allocation3 + $0x7f0] sm:$0xff]  ;;  %p3519_p8 = scmp.ne.s32.totalorder %s2355_s11, %s3518_s2  ;;  %p3524_p10 = scmp.lt.s32.totalorder %s3518_s2, %s3518_s2 }
 0x25a   :  { %3456 = vmatpush3.bf16.msra.mxu1 %v3455_v36  ;;  %v3445_v36 = vpack.c.bf16 %v2162_v51, %v2161_v1 }
 0x25b   :  { %3458 = vmatprep.subr.bf16.mxu1 %v3457_v3  ;;  %p3525_p11 = por %p3524_p10, %p3523_p9 }
 0x25c   :  { %3428 = vmatpush3.bf16.msra.mxu0 %v3427_v37  ;;  %v3477_v37 = vpack.c.bf16 %v2269_v5, %v2268_v34 }
 0x25d   :  { %3430 = vmatprep.subr.bf16.mxu0 %v3429_v59  ;;  %p3526_p12 = pnand %p3525_p11, %p3519_p8 }
 0x25e   :  { %3460 = vmatpush3.bf16.msra.mxu1 %v3459_v41  ;;  %v2163_v41 = vrot.slane %v4009_v27, 6 }
 0x25f   :  { %3462 = vmatprep.subr.bf16.mxu1 %v3461_v45 }
 0x260   :  { %3432 = vmatpush3.bf16.msra.mxu0 %v3431_v52 }
 0x261   :  { %3434 = vmatprep.subr.bf16.mxu0 %v3433_v53 }
 0x262   :  { %3464 = vmatpush3.bf16.msra.mxu1 %v3463_v18 }
 0x263   :  { %3466 = vmatprep.subr.bf16.mxu1 %v3465_v58 }
 0x264   :  { %3436 = vmatpush3.bf16.msra.mxu0 %v3435_v8 }
 0x265   :  { %3438 = vmatprep.subr.bf16.mxu0 %v3437_v61 }
 0x266   :  { %3468 = vmatpush3.bf16.msra.mxu1 %v3467_v49  ;;  %v2409_v46 = vpop.f32.mrb[2].mxu0 }
 0x267   :  { %v2410_v25 = vpop.f32.mrb[3].mxu0  ;;  %3470 = vmatprep.subr.bf16.mxu1 %v3469_v10 }
 0x268   :  { %v2411_v22 = vadd.f32 %v2410_v25, %v2409_v46  ;;  %3440 = vmatpush3.bf16.msra.mxu0 %v3439_v4  ;;  %v2444_v12 = vpop.f32.mrb[2].mxu1 }
 0x269   :  { %v2445_v32 = vpop.f32.mrb[3].mxu1  ;;  %3442 = vmatprep.subr.bf16.mxu0 %v3441_v7 }
 0x26a   :  { %v726_v3 = vadd.f32 %v2411_v22, %v623_v57  ;;  %v2446_v31 = vadd.f32 %v2445_v32, %v2444_v12  ;;  %3472 = vmatpush3.bf16.msra.mxu1 %v3471_v50 }
 0x26b   :  { %3474 = vmatprep.subr.bf16.mxu1 %v3473_v35 }
 0x26c   :  { %v836_v59 = vadd.f32 %v2446_v31, %v726_v3  ;;  %3444 = vmatpush3.bf16.msra.mxu0 %v3443_v2 }
 0x26d   :  { %3446 = vmatprep.subr.bf16.mxu0 %v3445_v36 }
 0x26e   :  { %3476 = vmatpush3.bf16.msra.mxu1 %v3475_v20 }
 0x26f   :  { %3478 = vmatprep.subr.bf16.mxu1 %v3477_v37 }
 0x270   :  { %3448 = vmatpush3.bf16.msra.mxu0 %v3447_v13 }
 0x272   :  { %3480 = vmatpush3.bf16.msra.mxu1 %v3479_v11 }
 0x273   :  { %2232 = vmatmul.mubr.f32.vlgmr.msra.gmra.mrb[16].mxu0 %v2163_v41 }
 0x275   :  { %2339 = vmatmul.mubr.f32.vlgmr.msra.gmra.mrb[16].mxu1 %v2270_v39 }
 0x286   :  { %v2479_v42 = vpop.f32.mrb[4].mxu0 }
 0x287   :  { %v2480_v45 = vpop.f32.mrb[5].mxu0 }
 0x288   :  { %v2481_v47 = vadd.f32 %v2480_v45, %v2479_v42  ;;  %v2514_v21 = vpop.f32.mrb[4].mxu1 }
 0x289   :  { %v2515_v52 = vpop.f32.mrb[5].mxu1 }
 0x28a   :  { %v944_v0 = vadd.f32 %v2481_v47, %v836_v59  ;;  %v2516_v29 = vadd.f32 %v2515_v52, %v2514_v21 }
 0x28c   :  { %v1052_v53 = vadd.f32 %v2516_v29, %v944_v0 }
 0x2a6   :  { %v2549_v54 = vpop.f32.mrb[6].mxu0 }
 0x2a7   :  { %v2550_v26 = vpop.f32.mrb[7].mxu0 }
 0x2a8   :  { %v2551_v18 = vadd.f32 %v2550_v26, %v2549_v54  ;;  %v2584_v19 = vpop.f32.mrb[6].mxu1 }
 0x2a9   :  { %v2585_v55 = vpop.f32.mrb[7].mxu1 }
 0x2aa   :  { %v1160_v58 = vadd.f32 %v2551_v18, %v1052_v53  ;;  %v2586_v48 = vadd.f32 %v2585_v55, %v2584_v19 }
 0x2ac   :  { %v1268_v30 = vadd.f32 %v2586_v48, %v1160_v58 }
 0x2c6   :  { %v2619_v8 = vpop.f32.mrb[8].mxu0 }
 0x2c7   :  { %v2620_v60 = vpop.f32.mrb[9].mxu0 }
 0x2c8   :  { %v2621_v27 = vadd.f32 %v2620_v60, %v2619_v8  ;;  %v2654_v43 = vpop.f32.mrb[8].mxu1 }
 0x2c9   :  { %v2655_v61 = vpop.f32.mrb[9].mxu1 }
 0x2ca   :  { %v1376_v62 = vadd.f32 %v2621_v27, %v1268_v30  ;;  %v2656_v63 = vadd.f32 %v2655_v61, %v2654_v43 }
 0x2cc   :  { %v1484_v49 = vadd.f32 %v2656_v63, %v1376_v62 }
 0x2ce   :  { %1486 = vst.msk [vmem:[#allocation6] sm:$0x1] %vm1485_vm9, %v1484_v49 }
 0x2e6   :  { %v2689_v44 = vpop.f32.mrb[10].mxu0 }
 0x2e7   :  { %v2690_v10 = vpop.f32.mrb[11].mxu0 }
 0x2e8   :  { %v2691_v15 = vadd.f32 %v2690_v10, %v2689_v44  ;;  %v2724_v56 = vpop.f32.mrb[10].mxu1 }
 0x2e9   :  { %v2725_v4 = vpop.f32.mrb[11].mxu1 }
 0x2ea   :  { %v1593_v23 = vadd.f32 %v2691_v15, %v1490_v9  ;;  %v2726_v6 = vadd.f32 %v2725_v4, %v2724_v56 }
 0x2ec   :  { %v1702_v7 = vadd.f32 %v2726_v6, %v1593_v23 }
 0x306   :  { %v2759_v14 = vpop.f32.mrb[12].mxu0 }
 0x307   :  { %v2760_v40 = vpop.f32.mrb[13].mxu0 }
 0x308   :  { %v2761_v46 = vadd.f32 %v2760_v40, %v2759_v14  ;;  %v2794_v50 = vpop.f32.mrb[12].mxu1 }
 0x309   :  { %v2795_v1 = vpop.f32.mrb[13].mxu1 }
 0x30a   :  { %v1809_v51 = vadd.f32 %v2761_v46, %v1702_v7  ;;  %v2796_v57 = vadd.f32 %v2795_v1, %v2794_v50 }
 0x30c   :  { %v1916_v25 = vadd.f32 %v2796_v57, %v1809_v51 }
 0x326   :  { %v2829_v35 = vpop.f32.mrb[14].mxu0 }
 0x327   :  { %v2830_v16 = vpop.f32.mrb[15].mxu0 }
 0x328   :  { %v2831_v17 = vadd.f32 %v2830_v16, %v2829_v35  ;;  %v2864_v22 = vpop.f32.mrb[14].mxu1 }
 0x329   :  { %v2865_v12 = vpop.f32.mrb[15].mxu1 }
 0x32a   :  { %v2023_v2 = vadd.f32 %v2831_v17, %v1916_v25  ;;  %v2866_v34 = vadd.f32 %v2865_v12, %v2864_v22 }
 0x32c   :  { %v2130_v5 = vadd.f32 %v2866_v34, %v2023_v2 }
 0x346   :  { %v2899_v32 = vpop.f32.mrb[16].mxu0 }
 0x347   :  { %v2900_v36 = vpop.f32.mrb[17].mxu0 }
 0x348   :  { %v2901_v28 = vadd.f32 %v2900_v36, %v2899_v32  ;;  %v2934_v33 = vpop.f32.mrb[16].mxu1 }
 0x349   :  { %v2935_v3 = vpop.f32.mrb[17].mxu1 }
 0x34a   :  { %v2237_v31 = vadd.f32 %v2901_v28, %v2130_v5  ;;  %v2936_v20 = vadd.f32 %v2935_v3, %v2934_v33 }
 0x34c   :  { %v2344_v37 = vadd.f32 %v2936_v20, %v2237_v31 }
 0x34e   :  { %2345 = vst.msk [vmem:[#allocation6 + $0x1] sm:$0x1] %vm1485_vm9, %v2344_v37 }
 0x34f   :  { %3529 = shalt.err (!%p3526_p12)
}
 0x350   :  { %s3530_s14 = scalar_lea.hbm %s4052_s7, 32 }
 0x351   :  { %p3531_p13 = scmp.ne.s32.totalorder %s4052_s7, %s3530_s14  ;;  %p3534_p0 = scmp.lt.u32.totalorder %s3530_s14, %s4052_s7 }
 0x353   :  { %p3536_p1 = pnand %p3534_p0, %p3531_p13 }
 0x355   :  { %3539 = shalt.err (!%p3536_p1)
}
 0x356   :  { %2357 = dma.vmem_to_hbm [thread:$0]  %s2355_s11, 32, %s4052_s7, [#allocation5]  }
 0x357   :  { %3542 = dma.done.wait [#allocation5], 32  }
 0x358   :  { %3543 = vsyncadd [#allocation5], 4294967264 }
 0x359   :  { %2363 = vsyncpa [#allocation4], 1 }
 0x35a   :  { %2364 = vsyncpa [#allocation5], 1 }

</bundles_post_ra>
